<compile_context>
chip_gen: v7x
topology: tpu7x:2x2x1
jax: 0.10.0
libtpu: 0.0.40
codegen_flags: <defaults>
</compile_context>

<pallas_src>
import math

import jax
import jax.numpy as jnp
import numpy as np
from jax import lax
from jax.experimental import pallas as pl
from jax.experimental.pallas import tpu as pltpu

HIDDEN = 64      # hidden_size from the PyTorch module
INPUT = 1        # input_size
NUM_LAYERS = 2   # num_layers (hard-wired as two stacked cells in the kernel)


def lstm_kernel(x_ref,        # (T, B, 1)   time-major input, f32
                wx0_ref,      # (1, 4H)     layer-0 input weights (row), f32
                b0_ref,       # (1, 4H)     layer-0 fused bias, f32
                whcat_ref,    # (2H, 8H)    block-diag [wh0 | wh1] recurrent, bf16
                wx1_ref,      # (H, 4H)     layer-1 input weights, bf16
                b1_ref,       # (1, 4H)     layer-1 fused bias, f32
                wlin_ref,     # (1, H)      final linear weights (row), f32
                blin_ref,     # (1, 1)      final linear bias, f32
                out_ref,      # (T, B, 1)   time-major output, f32
                gx0_s,        # (T, B, 4H)  scratch: precomputed layer-0 gate inputs
                h2_s):        # (T, B, H)   scratch: layer-1 hidden states
    T = x_ref.shape[0]
    B = x_ref.shape[1]
    H = wx1_ref.shape[0]

    # Loop-invariant weight loads, hoisted out of the recurrence.
    whcat = whcat_ref[...]
    wx1 = wx1_ref[...]
    b1 = b1_ref[...]

    # Layer-0 input projection + fused bias for ALL timesteps in one VPU pass
    # (input_size == 1, so x @ W_ih0^T == x * row).
    gx0_s[...] = x_ref[...] * wx0_ref[...] + b0_ref[...]        # (T, B, 4H)

    def gates(g, c_prev):
        # PyTorch gate order [i | f | g | o]
        i = jax.nn.sigmoid(g[:, 0:H])
        f = jax.nn.sigmoid(g[:, H:2 * H])
        gg = jnp.tanh(g[:, 2 * H:3 * H])
        o = jax.nn.sigmoid(g[:, 3 * H:4 * H])
        c_new = f * c_prev + i * gg
        h_new = o * jnp.tanh(c_new)
        return h_new, c_new

    def step(t, carry):
        h1, c1, h2, c2 = carry
        # Fused recurrent matmul for BOTH layers (both use previous-step h):
        #   [h1_prev | h2_prev] @ blockdiag(wh0, wh1) -> (B, 8H), K = 2H = 128.
        hcat = jnp.concatenate([h1, h2], axis=1).astype(jnp.bfloat16)
        rec = jnp.dot(hcat, whcat, preferred_element_type=jnp.float32)

        g0 = gx0_s[t] + rec[:, 0:4 * H]
        h1n, c1n = gates(g0, c1)

        # Layer-1 input projection depends on the freshly computed h1n.
        g1 = (jnp.dot(h1n.astype(jnp.bfloat16), wx1,
                      preferred_element_type=jnp.float32)
              + rec[:, 4 * H:8 * H] + b1)
        h2n, c2n = gates(g1, c2)

        h2_s[t] = h2n                       # lane-dense (B, H) store
        return (h1n, c1n, h2n, c2n)

    # Zero initial hidden / cell states (PyTorch default when hx is None),
    # carried as values through the (fully unrolled) time loop.
    z = jnp.zeros((B, H), jnp.float32)
    lax.fori_loop(0, T, step, (z, z, z, z), unroll=True)

    # Final Linear(H -> 1) for all timesteps at once. With N == 1 the MXU would
    # be nearly empty, so use a broadcast multiply + lane reduction instead.
    y = jnp.sum(h2_s[...] * wlin_ref[...], axis=-1, keepdims=True)  # (T, B, 1)
    out_ref[...] = y + blin_ref[...]


def _pack_kernel_params(p):
    """Kernel-side layouts: block-diagonal bf16 recurrent weights, bf16 wx1."""
    H = p["wh0"].shape[0]
    whcat = jnp.zeros((2 * H, 8 * H), jnp.float32)
    whcat = whcat.at[:H, :4 * H].set(p["wh0"])
    whcat = whcat.at[H:, 4 * H:].set(p["wh1"])
    return dict(
        wx0=p["wx0"],                        # (1, 4H)  f32
        b0=p["b0"],                          # (1, 4H)  f32
        whcat=whcat.astype(jnp.bfloat16),    # (2H, 8H) bf16
        wx1=p["wx1"].astype(jnp.bfloat16),   # (H, 4H)  bf16
        b1=p["b1"],                          # (1, 4H)  f32
        wlin_row=p["wlin"].T,                # (1, H)   f32
        blin=p["blin"],                      # (1, 1)   f32
    )


@jax.jit
def lstm_model_forward(x, params):
    """x: (B, T, I) float32 (batch_first, like PyTorch). Returns (B, T, 1)."""
    B, T, _ = x.shape
    H = params["wh0"].shape[0]
    kp = _pack_kernel_params(params)
    x_tm = jnp.transpose(x, (1, 0, 2))       # -> time-major (T, B, I)

    out_tm = pl.pallas_call(
        lstm_kernel,
        out_shape=jax.ShapeDtypeStruct((T, B, 1), jnp.float32),
        in_specs=[pl.BlockSpec(memory_space=pltpu.MemorySpace.VMEM)] * 8,
        out_specs=pl.BlockSpec(memory_space=pltpu.MemorySpace.VMEM),
        scratch_shapes=[pltpu.VMEM((T, B, 4 * H), jnp.float32),
                        pltpu.VMEM((T, B, H), jnp.float32)],
    )(x_tm, kp["wx0"], kp["b0"], kp["whcat"], kp["wx1"], kp["b1"],
      kp["wlin_row"], kp["blin"])

    return jnp.transpose(out_tm, (1, 0, 2))  # back to (B, T, 1)


def init_params(key, input_size, hidden_size):
    """Deterministic init matching PyTorch shapes: U(-1/sqrt(H), 1/sqrt(H))."""
    bound = 1.0 / math.sqrt(hidden_size)
    keys = jax.random.split(key, 10)

    def u(k, shape):
        return jax.random.uniform(k, shape, jnp.float32, -bound, bound)

    # PyTorch parameter shapes
    w_ih0 = u(keys[0], (4 * hidden_size, input_size))
    w_hh0 = u(keys[1], (4 * hidden_size, hidden_size))
    b_ih0 = u(keys[2], (4 * hidden_size,))
    b_hh0 = u(keys[3], (4 * hidden_size,))
    w_ih1 = u(keys[4], (4 * hidden_size, hidden_size))
    w_hh1 = u(keys[5], (4 * hidden_size, hidden_size))
    b_ih1 = u(keys[6], (4 * hidden_size,))
    b_hh1 = u(keys[7], (4 * hidden_size,))
    w_lin = u(keys[8], (1, hidden_size))
    b_lin = u(keys[9], (1,))

    # f32 reference layout: pre-transposed weights, fused biases.
    return dict(
        wx0=w_ih0.T,                       # (I, 4H)
        wh0=w_hh0.T,                       # (H, 4H)
        b0=(b_ih0 + b_hh0)[None, :],       # (1, 4H)
        wx1=w_ih1.T,                       # (H, 4H)
        wh1=w_hh1.T,                       # (H, 4H)
        b1=(b_ih1 + b_hh1)[None, :],       # (1, 4H)
        wlin=w_lin.T,                      # (H, 1)
        blin=b_lin[None, :],               # (1, 1)
    )


def lstm_ref(x, params):
    """Pure-JAX f32 reference of the same forward pass (for verification)."""
    B, T, _ = x.shape
    H = params["wh0"].shape[0]

    def cell(gx, h, c, wh, b):
        g = gx + h @ wh + b
        i = jax.nn.sigmoid(g[:, 0:H])
        f = jax.nn.sigmoid(g[:, H:2 * H])
        gg = jnp.tanh(g[:, 2 * H:3 * H])
        o = jax.nn.sigmoid(g[:, 3 * H:4 * H])
        c = f * c + i * gg
        h = o * jnp.tanh(c)
        return h, c

    h1 = jnp.zeros((B, H), jnp.float32)
    c1 = jnp.zeros((B, H), jnp.float32)
    h2 = jnp.zeros((B, H), jnp.float32)
    c2 = jnp.zeros((B, H), jnp.float32)
    outs = []
    for t in range(T):
        h1, c1 = cell(x[:, t, :] @ params["wx0"], h1, c1, params["wh0"], params["b0"])
        h2, c2 = cell(h1 @ params["wx1"], h2, c2, params["wh1"], params["b1"])
        outs.append(h2 @ params["wlin"] + params["blin"])
    return jnp.stack(outs, axis=1)  # (B, T, 1)


if __name__ == "__main__":
    key = jax.random.PRNGKey(0)
    pkey, xkey = jax.random.split(key)

    # B = 8 fills the f32 sublane count (review: B >= 8 avoids 75% sublane padding).
    B, T = 8, 8
    params = init_params(pkey, INPUT, HIDDEN)
    x = jax.random.normal(xkey, (B, T, INPUT), jnp.float32)

    out = lstm_model_forward(x, params)
    out = jax.block_until_ready(out)

    assert out.shape == (B, T, 1), out.shape
    ref = lstm_ref(x, params)
    np.testing.assert_allclose(np.asarray(out), np.asarray(ref), atol=2e-2, rtol=2e-2)

    print("KERNEL_OK")
</pallas_src>

<mosaic_0001>
module attributes {stable_mosaic.version = 11 : i64} {
  func.func @lstm_kernel(%arg0: memref<8x8x1xf32, #tpu.memory_space<vmem>>, %arg1: memref<1x256xf32, #tpu.memory_space<vmem>>, %arg2: memref<1x256xf32, #tpu.memory_space<vmem>>, %arg3: memref<128x512xbf16, #tpu.memory_space<vmem>>, %arg4: memref<64x256xbf16, #tpu.memory_space<vmem>>, %arg5: memref<1x256xf32, #tpu.memory_space<vmem>>, %arg6: memref<1x64xf32, #tpu.memory_space<vmem>>, %arg7: memref<1x1xf32, #tpu.memory_space<vmem>>, %arg8: memref<8x8x1xf32, #tpu.memory_space<vmem>>, %arg9: memref<8x8x256xf32, #tpu.memory_space<vmem>>, %arg10: memref<8x8x64xf32, #tpu.memory_space<vmem>>) attributes {dimension_semantics = [], scalar_prefetch = 0 : i64, scratch_operands = 2 : i64, tpu.core_type = #tpu.core_type<tc>} {
    %c0 = arith.constant 0 : index
    %c0_0 = arith.constant 0 : index
    %0 = vector.load %arg3[%c0, %c0_0] : memref<128x512xbf16, #tpu.memory_space<vmem>>, vector<128x512xbf16>
    %c0_1 = arith.constant 0 : index
    %c0_2 = arith.constant 0 : index
    %1 = vector.load %arg4[%c0_1, %c0_2] : memref<64x256xbf16, #tpu.memory_space<vmem>>, vector<64x256xbf16>
    %c0_3 = arith.constant 0 : index
    %c0_4 = arith.constant 0 : index
    %2 = vector.load %arg5[%c0_3, %c0_4] : memref<1x256xf32, #tpu.memory_space<vmem>>, vector<1x256xf32>
    %c0_5 = arith.constant 0 : index
    %c0_6 = arith.constant 0 : index
    %c0_7 = arith.constant 0 : index
    %3 = vector.load %arg0[%c0_5, %c0_6, %c0_7] : memref<8x8x1xf32, #tpu.memory_space<vmem>>, vector<8x8x1xf32>
    %c0_8 = arith.constant 0 : index
    %c0_9 = arith.constant 0 : index
    %4 = vector.load %arg1[%c0_8, %c0_9] : memref<1x256xf32, #tpu.memory_space<vmem>>, vector<1x256xf32>
    %5 = vector.shape_cast %4 : vector<1x256xf32> to vector<1x1x256xf32>
    %6 = vector.broadcast %3 : vector<8x8x1xf32> to vector<8x8x256xf32>
    %7 = vector.broadcast %5 : vector<1x1x256xf32> to vector<8x8x256xf32>
    %8 = arith.mulf %6, %7 : vector<8x8x256xf32>
    %c0_10 = arith.constant 0 : index
    %c0_11 = arith.constant 0 : index
    %9 = vector.load %arg2[%c0_10, %c0_11] : memref<1x256xf32, #tpu.memory_space<vmem>>, vector<1x256xf32>
    %10 = vector.shape_cast %9 : vector<1x256xf32> to vector<1x1x256xf32>
    %11 = vector.broadcast %10 : vector<1x1x256xf32> to vector<8x8x256xf32>
    %12 = arith.addf %8, %11 : vector<8x8x256xf32>
    %c0_12 = arith.constant 0 : index
    %c0_13 = arith.constant 0 : index
    %c0_14 = arith.constant 0 : index
    %13 = vector.load %arg9[%c0_12, %c0_13, %c0_14] : memref<8x8x256xf32, #tpu.memory_space<vmem>>, vector<8x8x256xf32>
    tpu.vector_store %arg9[%c0_12, %c0_13, %c0_14], %12 {strides = array<i32>} : memref<8x8x256xf32, #tpu.memory_space<vmem>>, vector<8x8x256xf32>,
    %cst = arith.constant 0.000000e+00 : f32
    %14 = vector.broadcast %cst : f32 to vector<8x64xf32>
    %c0_i32 = arith.constant 0 : i32
    %15 = tpu.concatenate %14, %14 in 1 : vector<8x64xf32>, vector<8x64xf32> -> vector<8x128xf32>
    %16 = arith.truncf %15 : vector<8x128xf32> to vector<8x128xbf16>
    %cst_15 = arith.constant dense<0.000000e+00> : vector<8x512xf32>
    %17 = tpu.matmul %16, %0, %cst_15 {dimension_numbers = #tpu.dot_dimension_numbers<[1], [0], [0], [1], [0, 0, 1, 1], [], []>} : vector<8x128xbf16>, vector<128x512xbf16>, vector<8x512xf32> -> vector<8x512xf32>
    %18 = arith.index_cast %c0_i32 : i32 to index
    %c0_16 = arith.constant 0 : index
    %c0_17 = arith.constant 0 : index
    %19 = vector.load %arg9[%18, %c0_16, %c0_17] : memref<8x8x256xf32, #tpu.memory_space<vmem>>, vector<1x8x256xf32>
    %20 = vector.shape_cast %19 : vector<1x8x256xf32> to vector<8x256xf32>
    %21 = vector.extract_strided_slice %17 {offsets = [0, 0], sizes = [8, 256], strides = [1, 1]} : vector<8x512xf32> to vector<8x256xf32>
    %22 = arith.addf %20, %21 : vector<8x256xf32>
    %23 = vector.extract_strided_slice %22 {offsets = [0, 0], sizes = [8, 64], strides = [1, 1]} : vector<8x256xf32> to vector<8x64xf32>
    %24 = arith.negf %23 : vector<8x64xf32>
    %25 = math.exp %24 : vector<8x64xf32>
    %cst_18 = arith.constant 1.000000e+00 : f32
    %26 = vector.broadcast %cst_18 : f32 to vector<8x64xf32>
    %27 = arith.addf %26, %25 : vector<8x64xf32>
    %28 = arith.divf %26, %27 : vector<8x64xf32>
    %29 = vector.extract_strided_slice %22 {offsets = [0, 64], sizes = [8, 64], strides = [1, 1]} : vector<8x256xf32> to vector<8x64xf32>
    %30 = arith.negf %29 : vector<8x64xf32>
    %31 = math.exp %30 : vector<8x64xf32>
    %cst_19 = arith.constant 1.000000e+00 : f32
    %32 = vector.broadcast %cst_19 : f32 to vector<8x64xf32>
    %33 = arith.addf %32, %31 : vector<8x64xf32>
    %34 = arith.divf %32, %33 : vector<8x64xf32>
    %35 = vector.extract_strided_slice %22 {offsets = [0, 128], sizes = [8, 64], strides = [1, 1]} : vector<8x256xf32> to vector<8x64xf32>
    %36 = math.tanh %35 : vector<8x64xf32>
    %37 = vector.extract_strided_slice %22 {offsets = [0, 192], sizes = [8, 64], strides = [1, 1]} : vector<8x256xf32> to vector<8x64xf32>
    %38 = arith.negf %37 : vector<8x64xf32>
    %39 = math.exp %38 : vector<8x64xf32>
    %cst_20 = arith.constant 1.000000e+00 : f32
    %40 = vector.broadcast %cst_20 : f32 to vector<8x64xf32>
    %41 = arith.addf %40, %39 : vector<8x64xf32>
    %42 = arith.divf %40, %41 : vector<8x64xf32>
    %43 = arith.mulf %34, %14 : vector<8x64xf32>
    %44 = arith.mulf %28, %36 : vector<8x64xf32>
    %45 = arith.addf %43, %44 : vector<8x64xf32>
    %46 = math.tanh %45 : vector<8x64xf32>
    %47 = arith.mulf %42, %46 : vector<8x64xf32>
    %48 = arith.truncf %47 : vector<8x64xf32> to vector<8x64xbf16>
    %cst_21 = arith.constant dense<0.000000e+00> : vector<8x256xf32>
    %49 = tpu.matmul %48, %1, %cst_21 {dimension_numbers = #tpu.dot_dimension_numbers<[1], [0], [0], [1], [0, 0, 1, 1], [], []>} : vector<8x64xbf16>, vector<64x256xbf16>, vector<8x256xf32> -> vector<8x256xf32>
    %50 = vector.extract_strided_slice %17 {offsets = [0, 256], sizes = [8, 256], strides = [1, 1]} : vector<8x512xf32> to vector<8x256xf32>
    %51 = arith.addf %49, %50 : vector<8x256xf32>
    %52 = vector.broadcast %2 : vector<1x256xf32> to vector<8x256xf32>
    %53 = arith.addf %51, %52 : vector<8x256xf32>
    %54 = vector.extract_strided_slice %53 {offsets = [0, 0], sizes = [8, 64], strides = [1, 1]} : vector<8x256xf32> to vector<8x64xf32>
    %55 = arith.negf %54 : vector<8x64xf32>
    %56 = math.exp %55 : vector<8x64xf32>
    %cst_22 = arith.constant 1.000000e+00 : f32
    %57 = vector.broadcast %cst_22 : f32 to vector<8x64xf32>
    %58 = arith.addf %57, %56 : vector<8x64xf32>
    %59 = arith.divf %57, %58 : vector<8x64xf32>
    %60 = vector.extract_strided_slice %53 {offsets = [0, 64], sizes = [8, 64], strides = [1, 1]} : vector<8x256xf32> to vector<8x64xf32>
    %61 = arith.negf %60 : vector<8x64xf32>
    %62 = math.exp %61 : vector<8x64xf32>
    %cst_23 = arith.constant 1.000000e+00 : f32
    %63 = vector.broadcast %cst_23 : f32 to vector<8x64xf32>
    %64 = arith.addf %63, %62 : vector<8x64xf32>
    %65 = arith.divf %63, %64 : vector<8x64xf32>
    %66 = vector.extract_strided_slice %53 {offsets = [0, 128], sizes = [8, 64], strides = [1, 1]} : vector<8x256xf32> to vector<8x64xf32>
    %67 = math.tanh %66 : vector<8x64xf32>
    %68 = vector.extract_strided_slice %53 {offsets = [0, 192], sizes = [8, 64], strides = [1, 1]} : vector<8x256xf32> to vector<8x64xf32>
    %69 = arith.negf %68 : vector<8x64xf32>
    %70 = math.exp %69 : vector<8x64xf32>
    %cst_24 = arith.constant 1.000000e+00 : f32
    %71 = vector.broadcast %cst_24 : f32 to vector<8x64xf32>
    %72 = arith.addf %71, %70 : vector<8x64xf32>
    %73 = arith.divf %71, %72 : vector<8x64xf32>
    %74 = arith.mulf %65, %14 : vector<8x64xf32>
    %75 = arith.mulf %59, %67 : vector<8x64xf32>
    %76 = arith.addf %74, %75 : vector<8x64xf32>
    %77 = math.tanh %76 : vector<8x64xf32>
    %78 = arith.mulf %73, %77 : vector<8x64xf32>
    %79 = arith.index_cast %c0_i32 : i32 to index
    %c0_25 = arith.constant 0 : index
    %c0_26 = arith.constant 0 : index
    %80 = vector.load %arg10[%79, %c0_25, %c0_26] : memref<8x8x64xf32, #tpu.memory_space<vmem>>, vector<1x8x64xf32>
    %81 = vector.shape_cast %80 : vector<1x8x64xf32> to vector<8x64xf32>
    %82 = vector.shape_cast %78 : vector<8x64xf32> to vector<1x8x64xf32>
    tpu.vector_store %arg10[%79, %c0_25, %c0_26], %82 {strides = array<i32>} : memref<8x8x64xf32, #tpu.memory_space<vmem>>, vector<1x8x64xf32>,
    %c1_i32 = arith.constant 1 : i32
    %83 = tpu.concatenate %47, %78 in 1 : vector<8x64xf32>, vector<8x64xf32> -> vector<8x128xf32>
    %84 = arith.truncf %83 : vector<8x128xf32> to vector<8x128xbf16>
    %cst_27 = arith.constant dense<0.000000e+00> : vector<8x512xf32>
    %85 = tpu.matmul %84, %0, %cst_27 {dimension_numbers = #tpu.dot_dimension_numbers<[1], [0], [0], [1], [0, 0, 1, 1], [], []>} : vector<8x128xbf16>, vector<128x512xbf16>, vector<8x512xf32> -> vector<8x512xf32>
    %86 = arith.index_cast %c1_i32 : i32 to index
    %c0_28 = arith.constant 0 : index
    %c0_29 = arith.constant 0 : index
    %87 = vector.load %arg9[%86, %c0_28, %c0_29] : memref<8x8x256xf32, #tpu.memory_space<vmem>>, vector<1x8x256xf32>
    %88 = vector.shape_cast %87 : vector<1x8x256xf32> to vector<8x256xf32>
    %89 = vector.extract_strided_slice %85 {offsets = [0, 0], sizes = [8, 256], strides = [1, 1]} : vector<8x512xf32> to vector<8x256xf32>
    %90 = arith.addf %88, %89 : vector<8x256xf32>
    %91 = vector.extract_strided_slice %90 {offsets = [0, 0], sizes = [8, 64], strides = [1, 1]} : vector<8x256xf32> to vector<8x64xf32>
    %92 = arith.negf %91 : vector<8x64xf32>
    %93 = math.exp %92 : vector<8x64xf32>
    %cst_30 = arith.constant 1.000000e+00 : f32
    %94 = vector.broadcast %cst_30 : f32 to vector<8x64xf32>
    %95 = arith.addf %94, %93 : vector<8x64xf32>
    %96 = arith.divf %94, %95 : vector<8x64xf32>
    %97 = vector.extract_strided_slice %90 {offsets = [0, 64], sizes = [8, 64], strides = [1, 1]} : vector<8x256xf32> to vector<8x64xf32>
    %98 = arith.negf %97 : vector<8x64xf32>
    %99 = math.exp %98 : vector<8x64xf32>
    %cst_31 = arith.constant 1.000000e+00 : f32
    %100 = vector.broadcast %cst_31 : f32 to vector<8x64xf32>
    %101 = arith.addf %100, %99 : vector<8x64xf32>
    %102 = arith.divf %100, %101 : vector<8x64xf32>
    %103 = vector.extract_strided_slice %90 {offsets = [0, 128], sizes = [8, 64], strides = [1, 1]} : vector<8x256xf32> to vector<8x64xf32>
    %104 = math.tanh %103 : vector<8x64xf32>
    %105 = vector.extract_strided_slice %90 {offsets = [0, 192], sizes = [8, 64], strides = [1, 1]} : vector<8x256xf32> to vector<8x64xf32>
    %106 = arith.negf %105 : vector<8x64xf32>
    %107 = math.exp %106 : vector<8x64xf32>
    %cst_32 = arith.constant 1.000000e+00 : f32
    %108 = vector.broadcast %cst_32 : f32 to vector<8x64xf32>
    %109 = arith.addf %108, %107 : vector<8x64xf32>
    %110 = arith.divf %108, %109 : vector<8x64xf32>
    %111 = arith.mulf %102, %45 : vector<8x64xf32>
    %112 = arith.mulf %96, %104 : vector<8x64xf32>
    %113 = arith.addf %111, %112 : vector<8x64xf32>
    %114 = math.tanh %113 : vector<8x64xf32>
    %115 = arith.mulf %110, %114 : vector<8x64xf32>
    %116 = arith.truncf %115 : vector<8x64xf32> to vector<8x64xbf16>
    %cst_33 = arith.constant dense<0.000000e+00> : vector<8x256xf32>
    %117 = tpu.matmul %116, %1, %cst_33 {dimension_numbers = #tpu.dot_dimension_numbers<[1], [0], [0], [1], [0, 0, 1, 1], [], []>} : vector<8x64xbf16>, vector<64x256xbf16>, vector<8x256xf32> -> vector<8x256xf32>
    %118 = vector.extract_strided_slice %85 {offsets = [0, 256], sizes = [8, 256], strides = [1, 1]} : vector<8x512xf32> to vector<8x256xf32>
    %119 = arith.addf %117, %118 : vector<8x256xf32>
    %120 = vector.broadcast %2 : vector<1x256xf32> to vector<8x256xf32>
    %121 = arith.addf %119, %120 : vector<8x256xf32>
    %122 = vector.extract_strided_slice %121 {offsets = [0, 0], sizes = [8, 64], strides = [1, 1]} : vector<8x256xf32> to vector<8x64xf32>
    %123 = arith.negf %122 : vector<8x64xf32>
    %124 = math.exp %123 : vector<8x64xf32>
    %cst_34 = arith.constant 1.000000e+00 : f32
    %125 = vector.broadcast %cst_34 : f32 to vector<8x64xf32>
    %126 = arith.addf %125, %124 : vector<8x64xf32>
    %127 = arith.divf %125, %126 : vector<8x64xf32>
    %128 = vector.extract_strided_slice %121 {offsets = [0, 64], sizes = [8, 64], strides = [1, 1]} : vector<8x256xf32> to vector<8x64xf32>
    %129 = arith.negf %128 : vector<8x64xf32>
    %130 = math.exp %129 : vector<8x64xf32>
    %cst_35 = arith.constant 1.000000e+00 : f32
    %131 = vector.broadcast %cst_35 : f32 to vector<8x64xf32>
    %132 = arith.addf %131, %130 : vector<8x64xf32>
    %133 = arith.divf %131, %132 : vector<8x64xf32>
    %134 = vector.extract_strided_slice %121 {offsets = [0, 128], sizes = [8, 64], strides = [1, 1]} : vector<8x256xf32> to vector<8x64xf32>
    %135 = math.tanh %134 : vector<8x64xf32>
    %136 = vector.extract_strided_slice %121 {offsets = [0, 192], sizes = [8, 64], strides = [1, 1]} : vector<8x256xf32> to vector<8x64xf32>
    %137 = arith.negf %136 : vector<8x64xf32>
    %138 = math.exp %137 : vector<8x64xf32>
    %cst_36 = arith.constant 1.000000e+00 : f32
    %139 = vector.broadcast %cst_36 : f32 to vector<8x64xf32>
    %140 = arith.addf %139, %138 : vector<8x64xf32>
    %141 = arith.divf %139, %140 : vector<8x64xf32>
    %142 = arith.mulf %133, %76 : vector<8x64xf32>
    %143 = arith.mulf %127, %135 : vector<8x64xf32>
    %144 = arith.addf %142, %143 : vector<8x64xf32>
    %145 = math.tanh %144 : vector<8x64xf32>
    %146 = arith.mulf %141, %145 : vector<8x64xf32>
    %147 = arith.index_cast %c1_i32 : i32 to index
    %c0_37 = arith.constant 0 : index
    %c0_38 = arith.constant 0 : index
    %148 = vector.load %arg10[%147, %c0_37, %c0_38] : memref<8x8x64xf32, #tpu.memory_space<vmem>>, vector<1x8x64xf32>
    %149 = vector.shape_cast %148 : vector<1x8x64xf32> to vector<8x64xf32>
    %150 = vector.shape_cast %146 : vector<8x64xf32> to vector<1x8x64xf32>
    tpu.vector_store %arg10[%147, %c0_37, %c0_38], %150 {strides = array<i32>} : memref<8x8x64xf32, #tpu.memory_space<vmem>>, vector<1x8x64xf32>,
    %c2_i32 = arith.constant 2 : i32
    %151 = tpu.concatenate %115, %146 in 1 : vector<8x64xf32>, vector<8x64xf32> -> vector<8x128xf32>
    %152 = arith.truncf %151 : vector<8x128xf32> to vector<8x128xbf16>
    %cst_39 = arith.constant dense<0.000000e+00> : vector<8x512xf32>
    %153 = tpu.matmul %152, %0, %cst_39 {dimension_numbers = #tpu.dot_dimension_numbers<[1], [0], [0], [1], [0, 0, 1, 1], [], []>} : vector<8x128xbf16>, vector<128x512xbf16>, vector<8x512xf32> -> vector<8x512xf32>
    %154 = arith.index_cast %c2_i32 : i32 to index
    %c0_40 = arith.constant 0 : index
    %c0_41 = arith.constant 0 : index
    %155 = vector.load %arg9[%154, %c0_40, %c0_41] : memref<8x8x256xf32, #tpu.memory_space<vmem>>, vector<1x8x256xf32>
    %156 = vector.shape_cast %155 : vector<1x8x256xf32> to vector<8x256xf32>
    %157 = vector.extract_strided_slice %153 {offsets = [0, 0], sizes = [8, 256], strides = [1, 1]} : vector<8x512xf32> to vector<8x256xf32>
    %158 = arith.addf %156, %157 : vector<8x256xf32>
    %159 = vector.extract_strided_slice %158 {offsets = [0, 0], sizes = [8, 64], strides = [1, 1]} : vector<8x256xf32> to vector<8x64xf32>
    %160 = arith.negf %159 : vector<8x64xf32>
    %161 = math.exp %160 : vector<8x64xf32>
    %cst_42 = arith.constant 1.000000e+00 : f32
    %162 = vector.broadcast %cst_42 : f32 to vector<8x64xf32>
    %163 = arith.addf %162, %161 : vector<8x64xf32>
    %164 = arith.divf %162, %163 : vector<8x64xf32>
    %165 = vector.extract_strided_slice %158 {offsets = [0, 64], sizes = [8, 64], strides = [1, 1]} : vector<8x256xf32> to vector<8x64xf32>
    %166 = arith.negf %165 : vector<8x64xf32>
    %167 = math.exp %166 : vector<8x64xf32>
    %cst_43 = arith.constant 1.000000e+00 : f32
    %168 = vector.broadcast %cst_43 : f32 to vector<8x64xf32>
    %169 = arith.addf %168, %167 : vector<8x64xf32>
    %170 = arith.divf %168, %169 : vector<8x64xf32>
    %171 = vector.extract_strided_slice %158 {offsets = [0, 128], sizes = [8, 64], strides = [1, 1]} : vector<8x256xf32> to vector<8x64xf32>
    %172 = math.tanh %171 : vector<8x64xf32>
    %173 = vector.extract_strided_slice %158 {offsets = [0, 192], sizes = [8, 64], strides = [1, 1]} : vector<8x256xf32> to vector<8x64xf32>
    %174 = arith.negf %173 : vector<8x64xf32>
    %175 = math.exp %174 : vector<8x64xf32>
    %cst_44 = arith.constant 1.000000e+00 : f32
    %176 = vector.broadcast %cst_44 : f32 to vector<8x64xf32>
    %177 = arith.addf %176, %175 : vector<8x64xf32>
    %178 = arith.divf %176, %177 : vector<8x64xf32>
    %179 = arith.mulf %170, %113 : vector<8x64xf32>
    %180 = arith.mulf %164, %172 : vector<8x64xf32>
    %181 = arith.addf %179, %180 : vector<8x64xf32>
    %182 = math.tanh %181 : vector<8x64xf32>
    %183 = arith.mulf %178, %182 : vector<8x64xf32>
    %184 = arith.truncf %183 : vector<8x64xf32> to vector<8x64xbf16>
    %cst_45 = arith.constant dense<0.000000e+00> : vector<8x256xf32>
    %185 = tpu.matmul %184, %1, %cst_45 {dimension_numbers = #tpu.dot_dimension_numbers<[1], [0], [0], [1], [0, 0, 1, 1], [], []>} : vector<8x64xbf16>, vector<64x256xbf16>, vector<8x256xf32> -> vector<8x256xf32>
    %186 = vector.extract_strided_slice %153 {offsets = [0, 256], sizes = [8, 256], strides = [1, 1]} : vector<8x512xf32> to vector<8x256xf32>
    %187 = arith.addf %185, %186 : vector<8x256xf32>
    %188 = vector.broadcast %2 : vector<1x256xf32> to vector<8x256xf32>
    %189 = arith.addf %187, %188 : vector<8x256xf32>
    %190 = vector.extract_strided_slice %189 {offsets = [0, 0], sizes = [8, 64], strides = [1, 1]} : vector<8x256xf32> to vector<8x64xf32>
    %191 = arith.negf %190 : vector<8x64xf32>
    %192 = math.exp %191 : vector<8x64xf32>
    %cst_46 = arith.constant 1.000000e+00 : f32
    %193 = vector.broadcast %cst_46 : f32 to vector<8x64xf32>
    %194 = arith.addf %193, %192 : vector<8x64xf32>
    %195 = arith.divf %193, %194 : vector<8x64xf32>
    %196 = vector.extract_strided_slice %189 {offsets = [0, 64], sizes = [8, 64], strides = [1, 1]} : vector<8x256xf32> to vector<8x64xf32>
    %197 = arith.negf %196 : vector<8x64xf32>
    %198 = math.exp %197 : vector<8x64xf32>
    %cst_47 = arith.constant 1.000000e+00 : f32
    %199 = vector.broadcast %cst_47 : f32 to vector<8x64xf32>
    %200 = arith.addf %199, %198 : vector<8x64xf32>
    %201 = arith.divf %199, %200 : vector<8x64xf32>
    %202 = vector.extract_strided_slice %189 {offsets = [0, 128], sizes = [8, 64], strides = [1, 1]} : vector<8x256xf32> to vector<8x64xf32>
    %203 = math.tanh %202 : vector<8x64xf32>
    %204 = vector.extract_strided_slice %189 {offsets = [0, 192], sizes = [8, 64], strides = [1, 1]} : vector<8x256xf32> to vector<8x64xf32>
    %205 = arith.negf %204 : vector<8x64xf32>
    %206 = math.exp %205 : vector<8x64xf32>
    %cst_48 = arith.constant 1.000000e+00 : f32
    %207 = vector.broadcast %cst_48 : f32 to vector<8x64xf32>
    %208 = arith.addf %207, %206 : vector<8x64xf32>
    %209 = arith.divf %207, %208 : vector<8x64xf32>
    %210 = arith.mulf %201, %144 : vector<8x64xf32>
    %211 = arith.mulf %195, %203 : vector<8x64xf32>
    %212 = arith.addf %210, %211 : vector<8x64xf32>
    %213 = math.tanh %212 : vector<8x64xf32>
    %214 = arith.mulf %209, %213 : vector<8x64xf32>
    %215 = arith.index_cast %c2_i32 : i32 to index
    %c0_49 = arith.constant 0 : index
    %c0_50 = arith.constant 0 : index
    %216 = vector.load %arg10[%215, %c0_49, %c0_50] : memref<8x8x64xf32, #tpu.memory_space<vmem>>, vector<1x8x64xf32>
    %217 = vector.shape_cast %216 : vector<1x8x64xf32> to vector<8x64xf32>
    %218 = vector.shape_cast %214 : vector<8x64xf32> to vector<1x8x64xf32>
    tpu.vector_store %arg10[%215, %c0_49, %c0_50], %218 {strides = array<i32>} : memref<8x8x64xf32, #tpu.memory_space<vmem>>, vector<1x8x64xf32>,
    %c3_i32 = arith.constant 3 : i32
    %219 = tpu.concatenate %183, %214 in 1 : vector<8x64xf32>, vector<8x64xf32> -> vector<8x128xf32>
    %220 = arith.truncf %219 : vector<8x128xf32> to vector<8x128xbf16>
    %cst_51 = arith.constant dense<0.000000e+00> : vector<8x512xf32>
    %221 = tpu.matmul %220, %0, %cst_51 {dimension_numbers = #tpu.dot_dimension_numbers<[1], [0], [0], [1], [0, 0, 1, 1], [], []>} : vector<8x128xbf16>, vector<128x512xbf16>, vector<8x512xf32> -> vector<8x512xf32>
    %222 = arith.index_cast %c3_i32 : i32 to index
    %c0_52 = arith.constant 0 : index
    %c0_53 = arith.constant 0 : index
    %223 = vector.load %arg9[%222, %c0_52, %c0_53] : memref<8x8x256xf32, #tpu.memory_space<vmem>>, vector<1x8x256xf32>
    %224 = vector.shape_cast %223 : vector<1x8x256xf32> to vector<8x256xf32>
    %225 = vector.extract_strided_slice %221 {offsets = [0, 0], sizes = [8, 256], strides = [1, 1]} : vector<8x512xf32> to vector<8x256xf32>
    %226 = arith.addf %224, %225 : vector<8x256xf32>
    %227 = vector.extract_strided_slice %226 {offsets = [0, 0], sizes = [8, 64], strides = [1, 1]} : vector<8x256xf32> to vector<8x64xf32>
    %228 = arith.negf %227 : vector<8x64xf32>
    %229 = math.exp %228 : vector<8x64xf32>
    %cst_54 = arith.constant 1.000000e+00 : f32
    %230 = vector.broadcast %cst_54 : f32 to vector<8x64xf32>
    %231 = arith.addf %230, %229 : vector<8x64xf32>
    %232 = arith.divf %230, %231 : vector<8x64xf32>
    %233 = vector.extract_strided_slice %226 {offsets = [0, 64], sizes = [8, 64], strides = [1, 1]} : vector<8x256xf32> to vector<8x64xf32>
    %234 = arith.negf %233 : vector<8x64xf32>
    %235 = math.exp %234 : vector<8x64xf32>
    %cst_55 = arith.constant 1.000000e+00 : f32
    %236 = vector.broadcast %cst_55 : f32 to vector<8x64xf32>
    %237 = arith.addf %236, %235 : vector<8x64xf32>
    %238 = arith.divf %236, %237 : vector<8x64xf32>
    %239 = vector.extract_strided_slice %226 {offsets = [0, 128], sizes = [8, 64], strides = [1, 1]} : vector<8x256xf32> to vector<8x64xf32>
    %240 = math.tanh %239 : vector<8x64xf32>
    %241 = vector.extract_strided_slice %226 {offsets = [0, 192], sizes = [8, 64], strides = [1, 1]} : vector<8x256xf32> to vector<8x64xf32>
    %242 = arith.negf %241 : vector<8x64xf32>
    %243 = math.exp %242 : vector<8x64xf32>
    %cst_56 = arith.constant 1.000000e+00 : f32
    %244 = vector.broadcast %cst_56 : f32 to vector<8x64xf32>
    %245 = arith.addf %244, %243 : vector<8x64xf32>
    %246 = arith.divf %244, %245 : vector<8x64xf32>
    %247 = arith.mulf %238, %181 : vector<8x64xf32>
    %248 = arith.mulf %232, %240 : vector<8x64xf32>
    %249 = arith.addf %247, %248 : vector<8x64xf32>
    %250 = math.tanh %249 : vector<8x64xf32>
    %251 = arith.mulf %246, %250 : vector<8x64xf32>
    %252 = arith.truncf %251 : vector<8x64xf32> to vector<8x64xbf16>
    %cst_57 = arith.constant dense<0.000000e+00> : vector<8x256xf32>
    %253 = tpu.matmul %252, %1, %cst_57 {dimension_numbers = #tpu.dot_dimension_numbers<[1], [0], [0], [1], [0, 0, 1, 1], [], []>} : vector<8x64xbf16>, vector<64x256xbf16>, vector<8x256xf32> -> vector<8x256xf32>
    %254 = vector.extract_strided_slice %221 {offsets = [0, 256], sizes = [8, 256], strides = [1, 1]} : vector<8x512xf32> to vector<8x256xf32>
    %255 = arith.addf %253, %254 : vector<8x256xf32>
    %256 = vector.broadcast %2 : vector<1x256xf32> to vector<8x256xf32>
    %257 = arith.addf %255, %256 : vector<8x256xf32>
    %258 = vector.extract_strided_slice %257 {offsets = [0, 0], sizes = [8, 64], strides = [1, 1]} : vector<8x256xf32> to vector<8x64xf32>
    %259 = arith.negf %258 : vector<8x64xf32>
    %260 = math.exp %259 : vector<8x64xf32>
    %cst_58 = arith.constant 1.000000e+00 : f32
    %261 = vector.broadcast %cst_58 : f32 to vector<8x64xf32>
    %262 = arith.addf %261, %260 : vector<8x64xf32>
    %263 = arith.divf %261, %262 : vector<8x64xf32>
    %264 = vector.extract_strided_slice %257 {offsets = [0, 64], sizes = [8, 64], strides = [1, 1]} : vector<8x256xf32> to vector<8x64xf32>
    %265 = arith.negf %264 : vector<8x64xf32>
    %266 = math.exp %265 : vector<8x64xf32>
    %cst_59 = arith.constant 1.000000e+00 : f32
    %267 = vector.broadcast %cst_59 : f32 to vector<8x64xf32>
    %268 = arith.addf %267, %266 : vector<8x64xf32>
    %269 = arith.divf %267, %268 : vector<8x64xf32>
    %270 = vector.extract_strided_slice %257 {offsets = [0, 128], sizes = [8, 64], strides = [1, 1]} : vector<8x256xf32> to vector<8x64xf32>
    %271 = math.tanh %270 : vector<8x64xf32>
    %272 = vector.extract_strided_slice %257 {offsets = [0, 192], sizes = [8, 64], strides = [1, 1]} : vector<8x256xf32> to vector<8x64xf32>
    %273 = arith.negf %272 : vector<8x64xf32>
    %274 = math.exp %273 : vector<8x64xf32>
    %cst_60 = arith.constant 1.000000e+00 : f32
    %275 = vector.broadcast %cst_60 : f32 to vector<8x64xf32>
    %276 = arith.addf %275, %274 : vector<8x64xf32>
    %277 = arith.divf %275, %276 : vector<8x64xf32>
    %278 = arith.mulf %269, %212 : vector<8x64xf32>
    %279 = arith.mulf %263, %271 : vector<8x64xf32>
    %280 = arith.addf %278, %279 : vector<8x64xf32>
    %281 = math.tanh %280 : vector<8x64xf32>
    %282 = arith.mulf %277, %281 : vector<8x64xf32>
    %283 = arith.index_cast %c3_i32 : i32 to index
    %c0_61 = arith.constant 0 : index
    %c0_62 = arith.constant 0 : index
    %284 = vector.load %arg10[%283, %c0_61, %c0_62] : memref<8x8x64xf32, #tpu.memory_space<vmem>>, vector<1x8x64xf32>
    %285 = vector.shape_cast %284 : vector<1x8x64xf32> to vector<8x64xf32>
    %286 = vector.shape_cast %282 : vector<8x64xf32> to vector<1x8x64xf32>
    tpu.vector_store %arg10[%283, %c0_61, %c0_62], %286 {strides = array<i32>} : memref<8x8x64xf32, #tpu.memory_space<vmem>>, vector<1x8x64xf32>,
    %c4_i32 = arith.constant 4 : i32
    %287 = tpu.concatenate %251, %282 in 1 : vector<8x64xf32>, vector<8x64xf32> -> vector<8x128xf32>
    %288 = arith.truncf %287 : vector<8x128xf32> to vector<8x128xbf16>
    %cst_63 = arith.constant dense<0.000000e+00> : vector<8x512xf32>
    %289 = tpu.matmul %288, %0, %cst_63 {dimension_numbers = #tpu.dot_dimension_numbers<[1], [0], [0], [1], [0, 0, 1, 1], [], []>} : vector<8x128xbf16>, vector<128x512xbf16>, vector<8x512xf32> -> vector<8x512xf32>
    %290 = arith.index_cast %c4_i32 : i32 to index
    %c0_64 = arith.constant 0 : index
    %c0_65 = arith.constant 0 : index
    %291 = vector.load %arg9[%290, %c0_64, %c0_65] : memref<8x8x256xf32, #tpu.memory_space<vmem>>, vector<1x8x256xf32>
    %292 = vector.shape_cast %291 : vector<1x8x256xf32> to vector<8x256xf32>
    %293 = vector.extract_strided_slice %289 {offsets = [0, 0], sizes = [8, 256], strides = [1, 1]} : vector<8x512xf32> to vector<8x256xf32>
    %294 = arith.addf %292, %293 : vector<8x256xf32>
    %295 = vector.extract_strided_slice %294 {offsets = [0, 0], sizes = [8, 64], strides = [1, 1]} : vector<8x256xf32> to vector<8x64xf32>
    %296 = arith.negf %295 : vector<8x64xf32>
    %297 = math.exp %296 : vector<8x64xf32>
    %cst_66 = arith.constant 1.000000e+00 : f32
    %298 = vector.broadcast %cst_66 : f32 to vector<8x64xf32>
    %299 = arith.addf %298, %297 : vector<8x64xf32>
    %300 = arith.divf %298, %299 : vector<8x64xf32>
    %301 = vector.extract_strided_slice %294 {offsets = [0, 64], sizes = [8, 64], strides = [1, 1]} : vector<8x256xf32> to vector<8x64xf32>
    %302 = arith.negf %301 : vector<8x64xf32>
    %303 = math.exp %302 : vector<8x64xf32>
    %cst_67 = arith.constant 1.000000e+00 : f32
    %304 = vector.broadcast %cst_67 : f32 to vector<8x64xf32>
    %305 = arith.addf %304, %303 : vector<8x64xf32>
    %306 = arith.divf %304, %305 : vector<8x64xf32>
    %307 = vector.extract_strided_slice %294 {offsets = [0, 128], sizes = [8, 64], strides = [1, 1]} : vector<8x256xf32> to vector<8x64xf32>
    %308 = math.tanh %307 : vector<8x64xf32>
    %309 = vector.extract_strided_slice %294 {offsets = [0, 192], sizes = [8, 64], strides = [1, 1]} : vector<8x256xf32> to vector<8x64xf32>
    %310 = arith.negf %309 : vector<8x64xf32>
    %311 = math.exp %310 : vector<8x64xf32>
    %cst_68 = arith.constant 1.000000e+00 : f32
    %312 = vector.broadcast %cst_68 : f32 to vector<8x64xf32>
    %313 = arith.addf %312, %311 : vector<8x64xf32>
    %314 = arith.divf %312, %313 : vector<8x64xf32>
    %315 = arith.mulf %306, %249 : vector<8x64xf32>
    %316 = arith.mulf %300, %308 : vector<8x64xf32>
    %317 = arith.addf %315, %316 : vector<8x64xf32>
    %318 = math.tanh %317 : vector<8x64xf32>
    %319 = arith.mulf %314, %318 : vector<8x64xf32>
    %320 = arith.truncf %319 : vector<8x64xf32> to vector<8x64xbf16>
    %cst_69 = arith.constant dense<0.000000e+00> : vector<8x256xf32>
    %321 = tpu.matmul %320, %1, %cst_69 {dimension_numbers = #tpu.dot_dimension_numbers<[1], [0], [0], [1], [0, 0, 1, 1], [], []>} : vector<8x64xbf16>, vector<64x256xbf16>, vector<8x256xf32> -> vector<8x256xf32>
    %322 = vector.extract_strided_slice %289 {offsets = [0, 256], sizes = [8, 256], strides = [1, 1]} : vector<8x512xf32> to vector<8x256xf32>
    %323 = arith.addf %321, %322 : vector<8x256xf32>
    %324 = vector.broadcast %2 : vector<1x256xf32> to vector<8x256xf32>
    %325 = arith.addf %323, %324 : vector<8x256xf32>
    %326 = vector.extract_strided_slice %325 {offsets = [0, 0], sizes = [8, 64], strides = [1, 1]} : vector<8x256xf32> to vector<8x64xf32>
    %327 = arith.negf %326 : vector<8x64xf32>
    %328 = math.exp %327 : vector<8x64xf32>
    %cst_70 = arith.constant 1.000000e+00 : f32
    %329 = vector.broadcast %cst_70 : f32 to vector<8x64xf32>
    %330 = arith.addf %329, %328 : vector<8x64xf32>
    %331 = arith.divf %329, %330 : vector<8x64xf32>
    %332 = vector.extract_strided_slice %325 {offsets = [0, 64], sizes = [8, 64], strides = [1, 1]} : vector<8x256xf32> to vector<8x64xf32>
    %333 = arith.negf %332 : vector<8x64xf32>
    %334 = math.exp %333 : vector<8x64xf32>
    %cst_71 = arith.constant 1.000000e+00 : f32
    %335 = vector.broadcast %cst_71 : f32 to vector<8x64xf32>
    %336 = arith.addf %335, %334 : vector<8x64xf32>
    %337 = arith.divf %335, %336 : vector<8x64xf32>
    %338 = vector.extract_strided_slice %325 {offsets = [0, 128], sizes = [8, 64], strides = [1, 1]} : vector<8x256xf32> to vector<8x64xf32>
    %339 = math.tanh %338 : vector<8x64xf32>
    %340 = vector.extract_strided_slice %325 {offsets = [0, 192], sizes = [8, 64], strides = [1, 1]} : vector<8x256xf32> to vector<8x64xf32>
    %341 = arith.negf %340 : vector<8x64xf32>
    %342 = math.exp %341 : vector<8x64xf32>
    %cst_72 = arith.constant 1.000000e+00 : f32
    %343 = vector.broadcast %cst_72 : f32 to vector<8x64xf32>
    %344 = arith.addf %343, %342 : vector<8x64xf32>
    %345 = arith.divf %343, %344 : vector<8x64xf32>
    %346 = arith.mulf %337, %280 : vector<8x64xf32>
    %347 = arith.mulf %331, %339 : vector<8x64xf32>
    %348 = arith.addf %346, %347 : vector<8x64xf32>
    %349 = math.tanh %348 : vector<8x64xf32>
    %350 = arith.mulf %345, %349 : vector<8x64xf32>
    %351 = arith.index_cast %c4_i32 : i32 to index
    %c0_73 = arith.constant 0 : index
    %c0_74 = arith.constant 0 : index
    %352 = vector.load %arg10[%351, %c0_73, %c0_74] : memref<8x8x64xf32, #tpu.memory_space<vmem>>, vector<1x8x64xf32>
    %353 = vector.shape_cast %352 : vector<1x8x64xf32> to vector<8x64xf32>
    %354 = vector.shape_cast %350 : vector<8x64xf32> to vector<1x8x64xf32>
    tpu.vector_store %arg10[%351, %c0_73, %c0_74], %354 {strides = array<i32>} : memref<8x8x64xf32, #tpu.memory_space<vmem>>, vector<1x8x64xf32>,
    %c5_i32 = arith.constant 5 : i32
    %355 = tpu.concatenate %319, %350 in 1 : vector<8x64xf32>, vector<8x64xf32> -> vector<8x128xf32>
    %356 = arith.truncf %355 : vector<8x128xf32> to vector<8x128xbf16>
    %cst_75 = arith.constant dense<0.000000e+00> : vector<8x512xf32>
    %357 = tpu.matmul %356, %0, %cst_75 {dimension_numbers = #tpu.dot_dimension_numbers<[1], [0], [0], [1], [0, 0, 1, 1], [], []>} : vector<8x128xbf16>, vector<128x512xbf16>, vector<8x512xf32> -> vector<8x512xf32>
    %358 = arith.index_cast %c5_i32 : i32 to index
    %c0_76 = arith.constant 0 : index
    %c0_77 = arith.constant 0 : index
    %359 = vector.load %arg9[%358, %c0_76, %c0_77] : memref<8x8x256xf32, #tpu.memory_space<vmem>>, vector<1x8x256xf32>
    %360 = vector.shape_cast %359 : vector<1x8x256xf32> to vector<8x256xf32>
    %361 = vector.extract_strided_slice %357 {offsets = [0, 0], sizes = [8, 256], strides = [1, 1]} : vector<8x512xf32> to vector<8x256xf32>
    %362 = arith.addf %360, %361 : vector<8x256xf32>
    %363 = vector.extract_strided_slice %362 {offsets = [0, 0], sizes = [8, 64], strides = [1, 1]} : vector<8x256xf32> to vector<8x64xf32>
    %364 = arith.negf %363 : vector<8x64xf32>
    %365 = math.exp %364 : vector<8x64xf32>
    %cst_78 = arith.constant 1.000000e+00 : f32
    %366 = vector.broadcast %cst_78 : f32 to vector<8x64xf32>
    %367 = arith.addf %366, %365 : vector<8x64xf32>
    %368 = arith.divf %366, %367 : vector<8x64xf32>
    %369 = vector.extract_strided_slice %362 {offsets = [0, 64], sizes = [8, 64], strides = [1, 1]} : vector<8x256xf32> to vector<8x64xf32>
    %370 = arith.negf %369 : vector<8x64xf32>
    %371 = math.exp %370 : vector<8x64xf32>
    %cst_79 = arith.constant 1.000000e+00 : f32
    %372 = vector.broadcast %cst_79 : f32 to vector<8x64xf32>
    %373 = arith.addf %372, %371 : vector<8x64xf32>
    %374 = arith.divf %372, %373 : vector<8x64xf32>
    %375 = vector.extract_strided_slice %362 {offsets = [0, 128], sizes = [8, 64], strides = [1, 1]} : vector<8x256xf32> to vector<8x64xf32>
    %376 = math.tanh %375 : vector<8x64xf32>
    %377 = vector.extract_strided_slice %362 {offsets = [0, 192], sizes = [8, 64], strides = [1, 1]} : vector<8x256xf32> to vector<8x64xf32>
    %378 = arith.negf %377 : vector<8x64xf32>
    %379 = math.exp %378 : vector<8x64xf32>
    %cst_80 = arith.constant 1.000000e+00 : f32
    %380 = vector.broadcast %cst_80 : f32 to vector<8x64xf32>
    %381 = arith.addf %380, %379 : vector<8x64xf32>
    %382 = arith.divf %380, %381 : vector<8x64xf32>
    %383 = arith.mulf %374, %317 : vector<8x64xf32>
    %384 = arith.mulf %368, %376 : vector<8x64xf32>
    %385 = arith.addf %383, %384 : vector<8x64xf32>
    %386 = math.tanh %385 : vector<8x64xf32>
    %387 = arith.mulf %382, %386 : vector<8x64xf32>
    %388 = arith.truncf %387 : vector<8x64xf32> to vector<8x64xbf16>
    %cst_81 = arith.constant dense<0.000000e+00> : vector<8x256xf32>
    %389 = tpu.matmul %388, %1, %cst_81 {dimension_numbers = #tpu.dot_dimension_numbers<[1], [0], [0], [1], [0, 0, 1, 1], [], []>} : vector<8x64xbf16>, vector<64x256xbf16>, vector<8x256xf32> -> vector<8x256xf32>
    %390 = vector.extract_strided_slice %357 {offsets = [0, 256], sizes = [8, 256], strides = [1, 1]} : vector<8x512xf32> to vector<8x256xf32>
    %391 = arith.addf %389, %390 : vector<8x256xf32>
    %392 = vector.broadcast %2 : vector<1x256xf32> to vector<8x256xf32>
    %393 = arith.addf %391, %392 : vector<8x256xf32>
    %394 = vector.extract_strided_slice %393 {offsets = [0, 0], sizes = [8, 64], strides = [1, 1]} : vector<8x256xf32> to vector<8x64xf32>
    %395 = arith.negf %394 : vector<8x64xf32>
    %396 = math.exp %395 : vector<8x64xf32>
    %cst_82 = arith.constant 1.000000e+00 : f32
    %397 = vector.broadcast %cst_82 : f32 to vector<8x64xf32>
    %398 = arith.addf %397, %396 : vector<8x64xf32>
    %399 = arith.divf %397, %398 : vector<8x64xf32>
    %400 = vector.extract_strided_slice %393 {offsets = [0, 64], sizes = [8, 64], strides = [1, 1]} : vector<8x256xf32> to vector<8x64xf32>
    %401 = arith.negf %400 : vector<8x64xf32>
    %402 = math.exp %401 : vector<8x64xf32>
    %cst_83 = arith.constant 1.000000e+00 : f32
    %403 = vector.broadcast %cst_83 : f32 to vector<8x64xf32>
    %404 = arith.addf %403, %402 : vector<8x64xf32>
    %405 = arith.divf %403, %404 : vector<8x64xf32>
    %406 = vector.extract_strided_slice %393 {offsets = [0, 128], sizes = [8, 64], strides = [1, 1]} : vector<8x256xf32> to vector<8x64xf32>
    %407 = math.tanh %406 : vector<8x64xf32>
    %408 = vector.extract_strided_slice %393 {offsets = [0, 192], sizes = [8, 64], strides = [1, 1]} : vector<8x256xf32> to vector<8x64xf32>
    %409 = arith.negf %408 : vector<8x64xf32>
    %410 = math.exp %409 : vector<8x64xf32>
    %cst_84 = arith.constant 1.000000e+00 : f32
    %411 = vector.broadcast %cst_84 : f32 to vector<8x64xf32>
    %412 = arith.addf %411, %410 : vector<8x64xf32>
    %413 = arith.divf %411, %412 : vector<8x64xf32>
    %414 = arith.mulf %405, %348 : vector<8x64xf32>
    %415 = arith.mulf %399, %407 : vector<8x64xf32>
    %416 = arith.addf %414, %415 : vector<8x64xf32>
    %417 = math.tanh %416 : vector<8x64xf32>
    %418 = arith.mulf %413, %417 : vector<8x64xf32>
    %419 = arith.index_cast %c5_i32 : i32 to index
    %c0_85 = arith.constant 0 : index
    %c0_86 = arith.constant 0 : index
    %420 = vector.load %arg10[%419, %c0_85, %c0_86] : memref<8x8x64xf32, #tpu.memory_space<vmem>>, vector<1x8x64xf32>
    %421 = vector.shape_cast %420 : vector<1x8x64xf32> to vector<8x64xf32>
    %422 = vector.shape_cast %418 : vector<8x64xf32> to vector<1x8x64xf32>
    tpu.vector_store %arg10[%419, %c0_85, %c0_86], %422 {strides = array<i32>} : memref<8x8x64xf32, #tpu.memory_space<vmem>>, vector<1x8x64xf32>,
    %c6_i32 = arith.constant 6 : i32
    %423 = tpu.concatenate %387, %418 in 1 : vector<8x64xf32>, vector<8x64xf32> -> vector<8x128xf32>
    %424 = arith.truncf %423 : vector<8x128xf32> to vector<8x128xbf16>
    %cst_87 = arith.constant dense<0.000000e+00> : vector<8x512xf32>
    %425 = tpu.matmul %424, %0, %cst_87 {dimension_numbers = #tpu.dot_dimension_numbers<[1], [0], [0], [1], [0, 0, 1, 1], [], []>} : vector<8x128xbf16>, vector<128x512xbf16>, vector<8x512xf32> -> vector<8x512xf32>
    %426 = arith.index_cast %c6_i32 : i32 to index
    %c0_88 = arith.constant 0 : index
    %c0_89 = arith.constant 0 : index
    %427 = vector.load %arg9[%426, %c0_88, %c0_89] : memref<8x8x256xf32, #tpu.memory_space<vmem>>, vector<1x8x256xf32>
    %428 = vector.shape_cast %427 : vector<1x8x256xf32> to vector<8x256xf32>
    %429 = vector.extract_strided_slice %425 {offsets = [0, 0], sizes = [8, 256], strides = [1, 1]} : vector<8x512xf32> to vector<8x256xf32>
    %430 = arith.addf %428, %429 : vector<8x256xf32>
    %431 = vector.extract_strided_slice %430 {offsets = [0, 0], sizes = [8, 64], strides = [1, 1]} : vector<8x256xf32> to vector<8x64xf32>
    %432 = arith.negf %431 : vector<8x64xf32>
    %433 = math.exp %432 : vector<8x64xf32>
    %cst_90 = arith.constant 1.000000e+00 : f32
    %434 = vector.broadcast %cst_90 : f32 to vector<8x64xf32>
    %435 = arith.addf %434, %433 : vector<8x64xf32>
    %436 = arith.divf %434, %435 : vector<8x64xf32>
    %437 = vector.extract_strided_slice %430 {offsets = [0, 64], sizes = [8, 64], strides = [1, 1]} : vector<8x256xf32> to vector<8x64xf32>
    %438 = arith.negf %437 : vector<8x64xf32>
    %439 = math.exp %438 : vector<8x64xf32>
    %cst_91 = arith.constant 1.000000e+00 : f32
    %440 = vector.broadcast %cst_91 : f32 to vector<8x64xf32>
    %441 = arith.addf %440, %439 : vector<8x64xf32>
    %442 = arith.divf %440, %441 : vector<8x64xf32>
    %443 = vector.extract_strided_slice %430 {offsets = [0, 128], sizes = [8, 64], strides = [1, 1]} : vector<8x256xf32> to vector<8x64xf32>
    %444 = math.tanh %443 : vector<8x64xf32>
    %445 = vector.extract_strided_slice %430 {offsets = [0, 192], sizes = [8, 64], strides = [1, 1]} : vector<8x256xf32> to vector<8x64xf32>
    %446 = arith.negf %445 : vector<8x64xf32>
    %447 = math.exp %446 : vector<8x64xf32>
    %cst_92 = arith.constant 1.000000e+00 : f32
    %448 = vector.broadcast %cst_92 : f32 to vector<8x64xf32>
    %449 = arith.addf %448, %447 : vector<8x64xf32>
    %450 = arith.divf %448, %449 : vector<8x64xf32>
    %451 = arith.mulf %442, %385 : vector<8x64xf32>
    %452 = arith.mulf %436, %444 : vector<8x64xf32>
    %453 = arith.addf %451, %452 : vector<8x64xf32>
    %454 = math.tanh %453 : vector<8x64xf32>
    %455 = arith.mulf %450, %454 : vector<8x64xf32>
    %456 = arith.truncf %455 : vector<8x64xf32> to vector<8x64xbf16>
    %cst_93 = arith.constant dense<0.000000e+00> : vector<8x256xf32>
    %457 = tpu.matmul %456, %1, %cst_93 {dimension_numbers = #tpu.dot_dimension_numbers<[1], [0], [0], [1], [0, 0, 1, 1], [], []>} : vector<8x64xbf16>, vector<64x256xbf16>, vector<8x256xf32> -> vector<8x256xf32>
    %458 = vector.extract_strided_slice %425 {offsets = [0, 256], sizes = [8, 256], strides = [1, 1]} : vector<8x512xf32> to vector<8x256xf32>
    %459 = arith.addf %457, %458 : vector<8x256xf32>
    %460 = vector.broadcast %2 : vector<1x256xf32> to vector<8x256xf32>
    %461 = arith.addf %459, %460 : vector<8x256xf32>
    %462 = vector.extract_strided_slice %461 {offsets = [0, 0], sizes = [8, 64], strides = [1, 1]} : vector<8x256xf32> to vector<8x64xf32>
    %463 = arith.negf %462 : vector<8x64xf32>
    %464 = math.exp %463 : vector<8x64xf32>
    %cst_94 = arith.constant 1.000000e+00 : f32
    %465 = vector.broadcast %cst_94 : f32 to vector<8x64xf32>
    %466 = arith.addf %465, %464 : vector<8x64xf32>
    %467 = arith.divf %465, %466 : vector<8x64xf32>
    %468 = vector.extract_strided_slice %461 {offsets = [0, 64], sizes = [8, 64], strides = [1, 1]} : vector<8x256xf32> to vector<8x64xf32>
    %469 = arith.negf %468 : vector<8x64xf32>
    %470 = math.exp %469 : vector<8x64xf32>
    %cst_95 = arith.constant 1.000000e+00 : f32
    %471 = vector.broadcast %cst_95 : f32 to vector<8x64xf32>
    %472 = arith.addf %471, %470 : vector<8x64xf32>
    %473 = arith.divf %471, %472 : vector<8x64xf32>
    %474 = vector.extract_strided_slice %461 {offsets = [0, 128], sizes = [8, 64], strides = [1, 1]} : vector<8x256xf32> to vector<8x64xf32>
    %475 = math.tanh %474 : vector<8x64xf32>
    %476 = vector.extract_strided_slice %461 {offsets = [0, 192], sizes = [8, 64], strides = [1, 1]} : vector<8x256xf32> to vector<8x64xf32>
    %477 = arith.negf %476 : vector<8x64xf32>
    %478 = math.exp %477 : vector<8x64xf32>
    %cst_96 = arith.constant 1.000000e+00 : f32
    %479 = vector.broadcast %cst_96 : f32 to vector<8x64xf32>
    %480 = arith.addf %479, %478 : vector<8x64xf32>
    %481 = arith.divf %479, %480 : vector<8x64xf32>
    %482 = arith.mulf %473, %416 : vector<8x64xf32>
    %483 = arith.mulf %467, %475 : vector<8x64xf32>
    %484 = arith.addf %482, %483 : vector<8x64xf32>
    %485 = math.tanh %484 : vector<8x64xf32>
    %486 = arith.mulf %481, %485 : vector<8x64xf32>
    %487 = arith.index_cast %c6_i32 : i32 to index
    %c0_97 = arith.constant 0 : index
    %c0_98 = arith.constant 0 : index
    %488 = vector.load %arg10[%487, %c0_97, %c0_98] : memref<8x8x64xf32, #tpu.memory_space<vmem>>, vector<1x8x64xf32>
    %489 = vector.shape_cast %488 : vector<1x8x64xf32> to vector<8x64xf32>
    %490 = vector.shape_cast %486 : vector<8x64xf32> to vector<1x8x64xf32>
    tpu.vector_store %arg10[%487, %c0_97, %c0_98], %490 {strides = array<i32>} : memref<8x8x64xf32, #tpu.memory_space<vmem>>, vector<1x8x64xf32>,
    %c7_i32 = arith.constant 7 : i32
    %491 = tpu.concatenate %455, %486 in 1 : vector<8x64xf32>, vector<8x64xf32> -> vector<8x128xf32>
    %492 = arith.truncf %491 : vector<8x128xf32> to vector<8x128xbf16>
    %cst_99 = arith.constant dense<0.000000e+00> : vector<8x512xf32>
    %493 = tpu.matmul %492, %0, %cst_99 {dimension_numbers = #tpu.dot_dimension_numbers<[1], [0], [0], [1], [0, 0, 1, 1], [], []>} : vector<8x128xbf16>, vector<128x512xbf16>, vector<8x512xf32> -> vector<8x512xf32>
    %494 = arith.index_cast %c7_i32 : i32 to index
    %c0_100 = arith.constant 0 : index
    %c0_101 = arith.constant 0 : index
    %495 = vector.load %arg9[%494, %c0_100, %c0_101] : memref<8x8x256xf32, #tpu.memory_space<vmem>>, vector<1x8x256xf32>
    %496 = vector.shape_cast %495 : vector<1x8x256xf32> to vector<8x256xf32>
    %497 = vector.extract_strided_slice %493 {offsets = [0, 0], sizes = [8, 256], strides = [1, 1]} : vector<8x512xf32> to vector<8x256xf32>
    %498 = arith.addf %496, %497 : vector<8x256xf32>
    %499 = vector.extract_strided_slice %498 {offsets = [0, 0], sizes = [8, 64], strides = [1, 1]} : vector<8x256xf32> to vector<8x64xf32>
    %500 = arith.negf %499 : vector<8x64xf32>
    %501 = math.exp %500 : vector<8x64xf32>
    %cst_102 = arith.constant 1.000000e+00 : f32
    %502 = vector.broadcast %cst_102 : f32 to vector<8x64xf32>
    %503 = arith.addf %502, %501 : vector<8x64xf32>
    %504 = arith.divf %502, %503 : vector<8x64xf32>
    %505 = vector.extract_strided_slice %498 {offsets = [0, 64], sizes = [8, 64], strides = [1, 1]} : vector<8x256xf32> to vector<8x64xf32>
    %506 = arith.negf %505 : vector<8x64xf32>
    %507 = math.exp %506 : vector<8x64xf32>
    %cst_103 = arith.constant 1.000000e+00 : f32
    %508 = vector.broadcast %cst_103 : f32 to vector<8x64xf32>
    %509 = arith.addf %508, %507 : vector<8x64xf32>
    %510 = arith.divf %508, %509 : vector<8x64xf32>
    %511 = vector.extract_strided_slice %498 {offsets = [0, 128], sizes = [8, 64], strides = [1, 1]} : vector<8x256xf32> to vector<8x64xf32>
    %512 = math.tanh %511 : vector<8x64xf32>
    %513 = vector.extract_strided_slice %498 {offsets = [0, 192], sizes = [8, 64], strides = [1, 1]} : vector<8x256xf32> to vector<8x64xf32>
    %514 = arith.negf %513 : vector<8x64xf32>
    %515 = math.exp %514 : vector<8x64xf32>
    %cst_104 = arith.constant 1.000000e+00 : f32
    %516 = vector.broadcast %cst_104 : f32 to vector<8x64xf32>
    %517 = arith.addf %516, %515 : vector<8x64xf32>
    %518 = arith.divf %516, %517 : vector<8x64xf32>
    %519 = arith.mulf %510, %453 : vector<8x64xf32>
    %520 = arith.mulf %504, %512 : vector<8x64xf32>
    %521 = arith.addf %519, %520 : vector<8x64xf32>
    %522 = math.tanh %521 : vector<8x64xf32>
    %523 = arith.mulf %518, %522 : vector<8x64xf32>
    %524 = arith.truncf %523 : vector<8x64xf32> to vector<8x64xbf16>
    %cst_105 = arith.constant dense<0.000000e+00> : vector<8x256xf32>
    %525 = tpu.matmul %524, %1, %cst_105 {dimension_numbers = #tpu.dot_dimension_numbers<[1], [0], [0], [1], [0, 0, 1, 1], [], []>} : vector<8x64xbf16>, vector<64x256xbf16>, vector<8x256xf32> -> vector<8x256xf32>
    %526 = vector.extract_strided_slice %493 {offsets = [0, 256], sizes = [8, 256], strides = [1, 1]} : vector<8x512xf32> to vector<8x256xf32>
    %527 = arith.addf %525, %526 : vector<8x256xf32>
    %528 = vector.broadcast %2 : vector<1x256xf32> to vector<8x256xf32>
    %529 = arith.addf %527, %528 : vector<8x256xf32>
    %530 = vector.extract_strided_slice %529 {offsets = [0, 0], sizes = [8, 64], strides = [1, 1]} : vector<8x256xf32> to vector<8x64xf32>
    %531 = arith.negf %530 : vector<8x64xf32>
    %532 = math.exp %531 : vector<8x64xf32>
    %cst_106 = arith.constant 1.000000e+00 : f32
    %533 = vector.broadcast %cst_106 : f32 to vector<8x64xf32>
    %534 = arith.addf %533, %532 : vector<8x64xf32>
    %535 = arith.divf %533, %534 : vector<8x64xf32>
    %536 = vector.extract_strided_slice %529 {offsets = [0, 64], sizes = [8, 64], strides = [1, 1]} : vector<8x256xf32> to vector<8x64xf32>
    %537 = arith.negf %536 : vector<8x64xf32>
    %538 = math.exp %537 : vector<8x64xf32>
    %cst_107 = arith.constant 1.000000e+00 : f32
    %539 = vector.broadcast %cst_107 : f32 to vector<8x64xf32>
    %540 = arith.addf %539, %538 : vector<8x64xf32>
    %541 = arith.divf %539, %540 : vector<8x64xf32>
    %542 = vector.extract_strided_slice %529 {offsets = [0, 128], sizes = [8, 64], strides = [1, 1]} : vector<8x256xf32> to vector<8x64xf32>
    %543 = math.tanh %542 : vector<8x64xf32>
    %544 = vector.extract_strided_slice %529 {offsets = [0, 192], sizes = [8, 64], strides = [1, 1]} : vector<8x256xf32> to vector<8x64xf32>
    %545 = arith.negf %544 : vector<8x64xf32>
    %546 = math.exp %545 : vector<8x64xf32>
    %cst_108 = arith.constant 1.000000e+00 : f32
    %547 = vector.broadcast %cst_108 : f32 to vector<8x64xf32>
    %548 = arith.addf %547, %546 : vector<8x64xf32>
    %549 = arith.divf %547, %548 : vector<8x64xf32>
    %550 = arith.mulf %541, %484 : vector<8x64xf32>
    %551 = arith.mulf %535, %543 : vector<8x64xf32>
    %552 = arith.addf %550, %551 : vector<8x64xf32>
    %553 = math.tanh %552 : vector<8x64xf32>
    %554 = arith.mulf %549, %553 : vector<8x64xf32>
    %555 = arith.index_cast %c7_i32 : i32 to index
    %c0_109 = arith.constant 0 : index
    %c0_110 = arith.constant 0 : index
    %556 = vector.load %arg10[%555, %c0_109, %c0_110] : memref<8x8x64xf32, #tpu.memory_space<vmem>>, vector<1x8x64xf32>
    %557 = vector.shape_cast %556 : vector<1x8x64xf32> to vector<8x64xf32>
    %558 = vector.shape_cast %554 : vector<8x64xf32> to vector<1x8x64xf32>
    tpu.vector_store %arg10[%555, %c0_109, %c0_110], %558 {strides = array<i32>} : memref<8x8x64xf32, #tpu.memory_space<vmem>>, vector<1x8x64xf32>,
    %c8_i32 = arith.constant 8 : i32
    %c0_111 = arith.constant 0 : index
    %c0_112 = arith.constant 0 : index
    %c0_113 = arith.constant 0 : index
    %559 = vector.load %arg10[%c0_111, %c0_112, %c0_113] : memref<8x8x64xf32, #tpu.memory_space<vmem>>, vector<8x8x64xf32>
    %c0_114 = arith.constant 0 : index
    %c0_115 = arith.constant 0 : index
    %560 = vector.load %arg6[%c0_114, %c0_115] : memref<1x64xf32, #tpu.memory_space<vmem>>, vector<1x64xf32>
    %561 = vector.shape_cast %560 : vector<1x64xf32> to vector<1x1x64xf32>
    %562 = vector.broadcast %561 : vector<1x1x64xf32> to vector<8x8x64xf32>
    %563 = arith.mulf %559, %562 : vector<8x8x64xf32>
    %cst_116 = arith.constant dense<0.000000e+00> : vector<8x8xf32>
    %564 = vector.multi_reduction <add>, %563, %cst_116 [2] : vector<8x8x64xf32> to vector<8x8xf32>
    %565 = vector.shape_cast %564 : vector<8x8xf32> to vector<8x8x1xf32>
    %c0_117 = arith.constant 0 : index
    %c0_118 = arith.constant 0 : index
    %566 = vector.load %arg7[%c0_117, %c0_118] : memref<1x1xf32, #tpu.memory_space<vmem>>, vector<1x1xf32>
    %567 = vector.shape_cast %566 : vector<1x1xf32> to vector<1x1x1xf32>
    %568 = vector.broadcast %567 : vector<1x1x1xf32> to vector<8x8x1xf32>
    %569 = arith.addf %565, %568 : vector<8x8x1xf32>
    %c0_119 = arith.constant 0 : index
    %c0_120 = arith.constant 0 : index
    %c0_121 = arith.constant 0 : index
    %570 = vector.load %arg8[%c0_119, %c0_120, %c0_121] : memref<8x8x1xf32, #tpu.memory_space<vmem>>, vector<8x8x1xf32>
    tpu.vector_store %arg8[%c0_119, %c0_120, %c0_121], %569 {strides = array<i32>} : memref<8x8x1xf32, #tpu.memory_space<vmem>>, vector<8x8x1xf32>,
    return
  }
}

</mosaic_0001>

<bundles_post_ra>
// kernel: lstm_model_forward.1
= control target key start
LH: loop header
LB: loop body
LE: loop exit
PB: predicated region body
PF: predicated region fallthrough
CT: control target
= control target key end

     0   :  { %v3532_v1 = vmov 0   ;;  %v2397_v18 = vmov 0.0|0.0   ;;  %v123_v19 = vlaneseq  ;;  %vm506_vm0 = vcmask 523264   ;;  %s3523_s3 = inlined_call_operand.vmem [shape: bf16[128,512], index: 3, kind: input, shape index: {}]   ;;  %s3524_s0 = inlined_call_operand.vmem [shape: f32[8,8,1], index: 0, kind: input, shape index: {}]   ;;  %s3525_s1 = inlined_call_operand.vmem [shape: f32[1,256], index: 1, kind: input, shape index: {}]   ;;  %s3526_s2 = inlined_call_operand.vmem [shape: f32[1,256], index: 2, kind: input, shape index: {}]   ;;  %s3527_s4 = inlined_call_operand.vmem [shape: bf16[64,256], index: 4, kind: input, shape index: {}]   ;;  %s3528_s5 = inlined_call_operand.vmem [shape: f32[1,256], index: 5, kind: input, shape index: {}]   ;;  %s3529_s7 = inlined_call_operand.<no memory space> [shape: f32[1,1], index: 7, kind: input, shape index: {}]   ;;  %s3530_s6 = inlined_call_operand.vmem [shape: f32[1,64], index: 6, kind: input, shape index: {}]   ;;  %s3531_s8 = inlined_call_operand.vmem [shape: f32[8,8,1], index: 8, kind: output, shape index: {}]  }
   0x1   :  { %v2447_v0 = vld [vmem:[%s3523_s3 + $0x4] ss:$16 sps:$4 sm:$0xff]   ;;  %386 = vmatprep.mubr.bf16.mxu0 %v3532_v1  ;;  %2102 = vset.pattern.permute.xlu0 %v3532_v1  ;;  %v2454_v2 = vld [vmem:[%s3523_s3] ss:$16 sps:$4 sm:$0xff]   ;;  %v2585_v46 = vld [vmem:[%s3523_s3 + $0xc] ss:$16 sps:$4 sm:$0xff]  }
   0x2   :  { %427 = vmatprep.mubr.bf16.mxu1 %v3532_v1  ;;  %2103 = vset.pattern.permute.xlu1 %v3532_v1  ;;  %v2462_v3 = vld [vmem:[%s3523_s3 + $0x24] ss:$16 sps:$4 sm:$0xff]   ;;  %v2468_v4 = vld [vmem:[%s3523_s3 + $0x20] ss:$16 sps:$4 sm:$0xff]   ;;  %v124_v20 = vshrl.u32 %v123_v19, 7  ;;  %vm2004_vm1 = vcmask 7168  }
   0x3   :  { %354 = vmatprep.subr.bf16.mxu0 %v2447_v0  ;;  %v2474_v5 = vld [vmem:[%s3523_s3 + $0x44] ss:$16 sps:$4 sm:$0xff]   ;;  %v2480_v6 = vld [vmem:[%s3523_s3 + $0x40] ss:$16 sps:$4 sm:$0xff]   ;;  %v2590_v47 = vld [vmem:[%s3523_s3 + $0x8] ss:$16 sps:$4 sm:$0xff]   ;;  %395 = vmatprep.subr.bf16.mxu1 %v2585_v46 }
   0x4   :  { %355 = vmatpush1.bf16.msra.mxu0 %v2454_v2  ;;  %v2486_v7 = vld [vmem:[%s3523_s3 + $0x64] ss:$16 sps:$4 sm:$0xff]   ;;  %v2495_v9 = vld [vmem:[%s3523_s3 + $0x60] ss:$16 sps:$4 sm:$0xff]   ;;  %v2549_v21 = vsub.s32 0, %v124_v20  ;;  %v2564_v28 = vsub.s32 1, %v124_v20  ;;  %396 = vmatpush1.bf16.msra.mxu1 %v2590_v47 }
   0x5   :  { %356 = vmatprep.subr.bf16.mxu0 %v2462_v3  ;;  %v73_v8 = vld [vmem:[%s3524_s0] sm:$0xff]  ;;  %v2595_v48 = vld [vmem:[%s3523_s3 + $0x2c] ss:$16 sps:$4 sm:$0xff]   ;;  %v2602_v49 = vld [vmem:[%s3523_s3 + $0x28] ss:$16 sps:$4 sm:$0xff]  }
   0x6   :  { %84 = vperm.xlu0 %2102, %v73_v8   ;;  %v2501_v10 = vld [vmem:[%s3523_s3 + $0x84] ss:$16 sps:$4 sm:$0xff]   ;;  %v2506_v11 = vld [vmem:[%s3523_s3 + $0x80] ss:$16 sps:$4 sm:$0xff]   ;;  %397 = vmatprep.subr.bf16.mxu1 %v2595_v48  ;;  %v2608_v50 = vld [vmem:[%s3523_s3 + $0x4c] ss:$16 sps:$4 sm:$0xff]  }
   0x7   :  { %v2511_v12 = vld [vmem:[%s3523_s3 + $0xa4] ss:$16 sps:$4 sm:$0xff]   ;;  %v2519_v13 = vld [vmem:[%s3523_s3 + $0xa0] ss:$16 sps:$4 sm:$0xff]   ;;  %v2623_v53 = vld [vmem:[%s3523_s3 + $0x48] ss:$16 sps:$4 sm:$0xff]  }
   0x8   :  { %357 = vmatpush1.bf16.msra.mxu0 %v2468_v4  ;;  %v2525_v14 = vld [vmem:[%s3523_s3 + $0xc4] ss:$16 sps:$4 sm:$0xff]   ;;  %v2531_v15 = vld [vmem:[%s3523_s3 + $0xc0] ss:$16 sps:$4 sm:$0xff]   ;;  %398 = vmatpush1.bf16.msra.mxu1 %v2602_v49  ;;  %v2642_v56 = vld [vmem:[%s3523_s3 + $0x6c] ss:$16 sps:$4 sm:$0xff]  }
   0x9   :  { %358 = vmatprep.subr.bf16.mxu0 %v2474_v5  ;;  %v2537_v16 = vld [vmem:[%s3523_s3 + $0xe4] ss:$16 sps:$4 sm:$0xff]   ;;  %v2543_v17 = vld [vmem:[%s3523_s3 + $0xe0] ss:$16 sps:$4 sm:$0xff]   ;;  %399 = vmatprep.subr.bf16.mxu1 %v2608_v50  ;;  %v2654_v58 = vld [vmem:[%s3523_s3 + $0x68] ss:$16 sps:$4 sm:$0xff]  }
   0xa   :  { %3551 = vst [vmem:[#allocation5_spill] sm:$0xff] %v2543_v17  ;;  %v81_v22 = vld [vmem:[%s3525_s1] sm:$0x3]  ;;  %s2398_s1 = smov 64   ;;  %v2613_v51 = vld [vmem:[%s3527_s4 + $0x4] ss:$8 sps:$4 sm:$0xff]  }
   0xb   :  { %v2555_v23 = vrot.slane %v81_v22, %v2549_v21  ;;  %v149_v25 = vld [vmem:[%s3526_s2] sm:$0x3]  ;;  %v2568_v31 = vrot.slane %v81_v22, %v2564_v28  ;;  %3554 = vst [vmem:[#allocation8_spill] sm:$0xff] %v2613_v51  ;;  %v2629_v54 = vld [vmem:[%s3527_s4 + $0x14] ss:$8 sps:$4 sm:$0xff]  }
   0xc   :  { %359 = vmatpush1.bf16.msra.mxu0 %v2480_v6  ;;  %v2562_v27 = vrot.slane %v149_v25, %v2549_v21  ;;  %v2572_v38 = vrot.slane %v149_v25, %v2564_v28  ;;  %v2618_v52 = vld [vmem:[%s3527_s4] ss:$8 sps:$4 sm:$0xff]   ;;  %v2636_v55 = vld [vmem:[%s3527_s4 + $0x10] ss:$8 sps:$4 sm:$0xff]   ;;  %v2648_v57 = vld [vmem:[%s3527_s4 + $0x24] ss:$8 sps:$4 sm:$0xff]   ;;  %400 = vmatpush1.bf16.msra.mxu1 %v2623_v53 }
   0xd   :  { %360 = vmatprep.subr.bf16.mxu0 %v2486_v7  ;;  %3552 = vst [vmem:[#allocation6_spill] sm:$0xff] %v2555_v23  ;;  %v2660_v59 = vld [vmem:[%s3527_s4 + $0x20] ss:$8 sps:$4 sm:$0xff]   ;;  %401 = vmatprep.subr.bf16.mxu1 %v2642_v56  ;;  %v2666_v60 = vld [vmem:[%s3523_s3 + $0x8c] ss:$16 sps:$4 sm:$0xff]  }
   0xe   :  { %3553 = vst [vmem:[#allocation7_spill] sm:$0xff] %v2562_v27  ;;  %v2672_v61 = vld [vmem:[%s3527_s4 + $0x34] ss:$8 sps:$4 sm:$0xff]   ;;  %v2678_v62 = vld [vmem:[%s3523_s3 + $0x88] ss:$16 sps:$4 sm:$0xff]  }
   0xf   :  { %v2684_v63 = vld [vmem:[%s3527_s4 + $0x30] ss:$8 sps:$4 sm:$0xff]   ;;  %v2690_v8 = vld [vmem:[%s3523_s3 + $0xac] ss:$16 sps:$4 sm:$0xff]  }
  0x10   :  { %361 = vmatpush1.bf16.msra.mxu0 %v2495_v9  ;;  %402 = vmatpush1.bf16.msra.mxu1 %v2654_v58  ;;  %v2697_v19 = vld [vmem:[%s3523_s3 + $0xa8] ss:$16 sps:$4 sm:$0xff]   ;;  %v2704_v20 = vld [vmem:[%s3523_s3 + $0xcc] ss:$16 sps:$4 sm:$0xff]  }
  0x11   :  { %362 = vmatprep.subr.bf16.mxu0 %v2501_v10  ;;  %403 = vmatprep.subr.bf16.mxu1 %v2666_v60  ;;  %v2711_v22 = vld [vmem:[%s3523_s3 + $0xc8] ss:$16 sps:$4 sm:$0xff]  }
  0x12   :  { %v2723_v25 = vld [vmem:[%s3523_s3 + $0xe8] ss:$16 sps:$4 sm:$0xff]  }
  0x14   :  { %363 = vmatpush1.bf16.msra.mxu0 %v2506_v11  ;;  %404 = vmatpush1.bf16.msra.mxu1 %v2678_v62 }
  0x15   :  { %364 = vmatprep.subr.bf16.mxu0 %v2511_v12  ;;  %405 = vmatprep.subr.bf16.mxu1 %v2690_v8 }
  0x18   :  { %365 = vmatpush1.bf16.msra.mxu0 %v2519_v13  ;;  %406 = vmatpush1.bf16.msra.mxu1 %v2697_v19 }
  0x19   :  { %366 = vmatprep.subr.bf16.mxu0 %v2525_v14  ;;  %407 = vmatprep.subr.bf16.mxu1 %v2704_v20 }
  0x1c   :  { %367 = vmatpush1.bf16.msra.mxu0 %v2531_v15  ;;  %408 = vmatpush1.bf16.msra.mxu1 %v2711_v22 }
  0x1d   :  { %368 = vmatprep.subr.bf16.mxu0 %v2537_v16 }
  0x20   :  { %369 = vmatpush1.bf16.msra.mxu0 %v2543_v17 }
  0x21   :  { %510 = vmatprep.subr.bf16.mxu0 %v2613_v51 }
  0x23   :  { %387 = vmatmul.mubr.bf16.vlgmr.msra.gmra.mrb[0].mxu0 %v2397_v18 }
  0x24   :  { %542 = vmatprep.mubr.bf16.mxu0 %v3532_v1  ;;  %511 = vmatpush1.bf16.msra.mxu0 %v2618_v52 }
  0x25   :  { %512 = vmatprep.subr.bf16.mxu0 %v2629_v54 }
  0x28   :  { %513 = vmatpush1.bf16.msra.mxu0 %v2636_v55 }
  0x29   :  { %514 = vmatprep.subr.bf16.mxu0 %v2648_v57 }
  0x2c   :  { %515 = vmatpush1.bf16.msra.mxu0 %v2660_v59 }
  0x2d   :  { %516 = vmatprep.subr.bf16.mxu0 %v2672_v61 }
  0x30   :  { %517 = vmatpush1.bf16.msra.mxu0 %v2684_v63 }
  0x31   :  { %638 = vmatprep.subr.bf16.mxu0 %v2585_v46 }
  0x85   :  { %v85_v24 = vpop.permute.xlu0 %84 }
  0x86   :  { %v133_v26 = vmul.f32 %v2555_v23, %v85_v24  ;;  %v134_v37 = vmul.f32 %v2568_v31, %v85_v24  ;;  %v2717_v24 = vld [vmem:[%s3523_s3 + $0xec] ss:$16 sps:$4 sm:$0xff]  }
  0x87   :  { %409 = vmatprep.subr.bf16.mxu1 %v2717_v24 }
  0x88   :  { %v161_v29 = vadd.f32 %v2562_v27, %v133_v26  ;;  %v162_v39 = vadd.f32 %v2572_v38, %v134_v37  ;;  %410 = vmatpush1.bf16.msra.mxu1 %v2723_v25 }
  0x89   :  { %597 = vmatprep.subr.bf16.mxu1 %v2447_v0 }
  0x8b   :  { %428 = vmatmul.mubr.bf16.vlgmr.msra.gmra.mrb[0].mxu1 %v2397_v18 }
  0x8c   :  { %598 = vmatpush1.bf16.msra.mxu1 %v2454_v2  ;;  %629 = vmatprep.mubr.bf16.mxu1 %v3532_v1 }
  0x8d   :  { %599 = vmatprep.subr.bf16.mxu1 %v2462_v3 }
  0x90   :  { %600 = vmatpush1.bf16.msra.mxu1 %v2468_v4 }
  0x91   :  { %601 = vmatprep.subr.bf16.mxu1 %v2474_v5 }
  0x94   :  { %602 = vmatpush1.bf16.msra.mxu1 %v2480_v6 }
  0x95   :  { %603 = vmatprep.subr.bf16.mxu1 %v2486_v7 }
  0x98   :  { %604 = vmatpush1.bf16.msra.mxu1 %v2495_v9 }
  0x99   :  { %605 = vmatprep.subr.bf16.mxu1 %v2501_v10 }
  0x9c   :  { %606 = vmatpush1.bf16.msra.mxu1 %v2506_v11 }
  0x9d   :  { %607 = vmatprep.subr.bf16.mxu1 %v2511_v12 }
  0xa0   :  { %608 = vmatpush1.bf16.msra.mxu1 %v2519_v13 }
  0xa1   :  { %609 = vmatprep.subr.bf16.mxu1 %v2525_v14 }
  0xa4   :  { %610 = vmatpush1.bf16.msra.mxu1 %v2531_v15 }
  0xa5   :  { %611 = vmatprep.subr.bf16.mxu1 %v2537_v16 }
  0xa8   :  { %612 = vmatpush1.bf16.msra.mxu1 %v2543_v17 }
  0xa9   :  { %713 = vmatprep.subr.bf16.mxu1 %v2613_v51 }
  0xf6   :  { %v388_v30 = vpop.f32.mrb[0].mxu0 }
  0xf7   :  { %v438_v32 = vadd.f32 %v388_v30, %v161_v29  ;;  %v390_v33 = vpop.f32.mrb[1].mxu0 }
  0xf8   :  { %v392_v34 = vpop.f32.mrb[2].mxu0  ;;  %v2575_v40 = vadd.f32 %v390_v33, %v162_v39 }
  0xf9   :  { %v2049_v35 = vmul.f32 -1.442695, %v438_v32  ;;  %v393_v36 = vpop.f32.mrb[3].mxu0 }
  0xfa   :  { %v2050_v18 = vmul.f32 -1.442695, %v2575_v40 }
  0xfb   :  { %2164 = vpow2.f32 %v2049_v35 }
  0xfc   :  { %2166 = vtanh.f32 %v2575_v40 }
 0x105   :  { %v2165_v41 = vpop.eup %2164 }
 0x106   :  { %v443_v42 = vadd.f32 1.0, %v2165_v41  ;;  %v2167_v43 = vpop.eup %2166 }
 0x108   :  { %2168 = vrcp.f32 %v443_v42 }
 0x109   :  { %2170 = vpow2.f32 %v2050_v18 }
 0x112   :  { %v2578_v44 = vpop.eup %2168 }
 0x113   :  { %v454_v45 = vmul.f32 %v2578_v44, %v2167_v43  ;;  %v2171_v26 = vpop.eup %2170  ;;  %v453_v30 = vmul.f32 0.0, %v2578_v44  ;;  %v72_v44 = vld [vmem:[%s3528_s5] sm:$0x3] }
 0x114   :  { %v450_v29 = vadd.f32 1.0, %v2171_v26 }
 0x115   :  { %456 = vrot.lane.b32.xlu0 %v454_v45, %s2398_s1  ;;  %v2775_v45 = vrot.slane %v72_v44, %v2549_v21 }
 0x116   :  { %2172 = vrcp.f32 %v450_v29 }
 0x120   :  { %v2173_v34 = vpop.eup %2172 }
 0x15e   :  { %v429_v40 = vpop.f32.mrb[0].mxu1 }
 0x15f   :  { %v431_v41 = vpop.f32.mrb[1].mxu1 }
 0x160   :  { %v433_v42 = vpop.f32.mrb[2].mxu1 }
 0x161   :  { %v434_v43 = vpop.f32.mrb[3].mxu1 }
 0x187   :  { %v457_v32 = vpop.permute.xlu0 %456 }
 0x188   :  { %v2748_v33 = vadd.f32 %v457_v32, %v453_v30 }
 0x18a   :  { %2174 = vtanh.f32 %v2748_v33 }
 0x194   :  { %v2175_v35 = vpop.eup %2174 }
 0x195   :  { %v461_v36 = vmul.f32 %v2175_v35, %v2173_v34 }
 0x197   :  { %592 = vrot.lane.b32.xlu0 %v461_v36, %s2398_s1  ;;  %v462_v37 = vpack.c.bf16 %v461_v36, %v461_v36 }
 0x199   :  { %464 = vrot.lane.b32.xlu1 %v462_v37, %s2398_s1  ;;  %v2779_v37 = vrot.slane %v72_v44, %v2564_v28 }
 0x20b   :  { %v465_v39 = vpop.permute.xlu1 %464 }
 0x20c   :  { %2059 = vmatmul.mubr.msk.bf16.vlgmr.msra.gmra.mrb[4].mxu0 %vm506_vm0, %v465_v39 }
 0x20d   :  { %639 = vmatpush1.bf16.msra.mxu0 %v2590_v47  ;;  %670 = vmatprep.mubr.bf16.mxu0 %v3532_v1 }
 0x20e   :  { %640 = vmatprep.subr.bf16.mxu0 %v2595_v48 }
 0x211   :  { %641 = vmatpush1.bf16.msra.mxu0 %v2602_v49 }
 0x212   :  { %642 = vmatprep.subr.bf16.mxu0 %v2608_v50 }
 0x215   :  { %643 = vmatpush1.bf16.msra.mxu0 %v2623_v53 }
 0x216   :  { %644 = vmatprep.subr.bf16.mxu0 %v2642_v56 }
 0x219   :  { %645 = vmatpush1.bf16.msra.mxu0 %v2654_v58 }
 0x21a   :  { %646 = vmatprep.subr.bf16.mxu0 %v2666_v60 }
 0x21d   :  { %647 = vmatpush1.bf16.msra.mxu0 %v2678_v62 }
 0x21e   :  { %648 = vmatprep.subr.bf16.mxu0 %v2690_v8 }
 0x221   :  { %649 = vmatpush1.bf16.msra.mxu0 %v2697_v19 }
 0x222   :  { %650 = vmatprep.subr.bf16.mxu0 %v2704_v20 }
 0x225   :  { %651 = vmatpush1.bf16.msra.mxu0 %v2711_v22 }
 0x226   :  { %652 = vmatprep.subr.bf16.mxu0 %v2717_v24 }
 0x229   :  { %653 = vmatpush1.bf16.msra.mxu0 %v2723_v25 }
 0x22a   :  { %790 = vmatprep.subr.bf16.mxu0 %v2447_v0 }
 0x2df   :  { %v544_v18 = vpop.f32.mrb[4].mxu0 }
 0x2e0   :  { %v545_v26 = vadd.f32 %v544_v18, %v429_v40  ;;  %v546_v29 = vpop.f32.mrb[5].mxu0 }
 0x2e1   :  { %v547_v30 = vadd.f32 %v546_v29, %v431_v41  ;;  %v548_v32 = vpop.f32.mrb[6].mxu0  ;;  %v74_v41 = vld [vmem:[%s3524_s0 + $0x8] sm:$0xff] }
 0x2e2   :  { %v562_v34 = vadd.f32 %v2775_v45, %v545_v26  ;;  %v549_v35 = vpop.f32.mrb[7].mxu0 }
 0x2e3   :  { %v563_v39 = vadd.f32 %v2779_v37, %v547_v30 }
 0x2e4   :  { %v2060_v36 = vmul.f32 -1.442695, %v562_v34 }
 0x2e5   :  { %v2061_v18 = vmul.f32 -1.442695, %v563_v39 }
 0x2e6   :  { %2176 = vpow2.f32 %v2060_v36  ;;  %v593_v36 = vpop.permute.xlu0 %592 }
 0x2e7   :  { %2178 = vtanh.f32 %v563_v39 }
 0x2f0   :  { %v2177_v42 = vpop.eup %2176 }
 0x2f1   :  { %v567_v43 = vadd.f32 1.0, %v2177_v42  ;;  %v2179_v21 = vpop.eup %2178 }
 0x2f3   :  { %2180 = vrcp.f32 %v567_v43 }
 0x2f4   :  { %2182 = vpow2.f32 %v2061_v18 }
 0x2fd   :  { %v2181_v1 = vpop.eup %2180 }
 0x2fe   :  { %v578_v40 = vmul.f32 %v2181_v1, %v2179_v21  ;;  %v2183_v28 = vpop.eup %2182  ;;  %v577_v26 = vmul.f32 0.0, %v2181_v1  ;;  %v3556_v1 = vmov 0  }
 0x2ff   :  { %v574_v44 = vadd.f32 1.0, %v2183_v28 }
 0x300   :  { %580 = vrot.lane.b32.xlu1 %v578_v40, %s2398_s1 }
 0x301   :  { %2184 = vrcp.f32 %v574_v44 }
 0x304   :  { %89 = vperm.xlu1 %2103, %v74_v41  }
 0x30b   :  { %v2185_v32 = vpop.eup %2184 }
 0x372   :  { %v581_v29 = vpop.permute.xlu1 %580 }
 0x373   :  { %v2786_v30 = vadd.f32 %v581_v29, %v577_v26 }
 0x375   :  { %2186 = vtanh.f32 %v2786_v30 }
 0x37f   :  { %v2187_v34 = vpop.eup %2186 }
 0x380   :  { %v2789_v35 = vmul.f32 %v2187_v34, %v2185_v32 }
 0x382   :  { %3555 = vst [vmem:[#allocation9_spill] sm:$0xff] %v2789_v35  ;;  %v595_v42 = vsel %vm506_vm0, %v593_v36, %v2789_v35 }
 0x383   :  { %v596_v43 = vpack.c.bf16 %v595_v42, %v595_v42  ;;  %v90_v39 = vpop.permute.xlu1 %89 }
 0x384   :  { %v135_v21 = vmul.f32 %v2555_v23, %v90_v39 }
 0x385   :  { %630 = vmatmul.mubr.bf16.vlgmr.msra.gmra.mrb[4].mxu1 %v596_v43  ;;  %671 = vmatmul.mubr.bf16.vlgmr.msra.gmra.mrb[8].mxu0 %v596_v43  ;;  %v136_v43 = vmul.f32 %v2568_v31, %v90_v39 }
 0x386   :  { %714 = vmatpush1.bf16.msra.mxu1 %v2618_v52  ;;  %745 = vmatprep.mubr.bf16.mxu1 %v3556_v1  ;;  %v163_v40 = vadd.f32 %v2562_v27, %v135_v21 }
 0x387   :  { %715 = vmatprep.subr.bf16.mxu1 %v2629_v54  ;;  %791 = vmatpush1.bf16.msra.mxu0 %v2454_v2  ;;  %v164_v35 = vadd.f32 %v2572_v38, %v136_v43 }
 0x388   :  { %792 = vmatprep.subr.bf16.mxu0 %v2462_v3  ;;  %822 = vmatprep.mubr.bf16.mxu0 %v3556_v1 }
 0x38a   :  { %716 = vmatpush1.bf16.msra.mxu1 %v2636_v55 }
 0x38b   :  { %717 = vmatprep.subr.bf16.mxu1 %v2648_v57  ;;  %793 = vmatpush1.bf16.msra.mxu0 %v2468_v4 }
 0x38c   :  { %794 = vmatprep.subr.bf16.mxu0 %v2474_v5 }
 0x38e   :  { %718 = vmatpush1.bf16.msra.mxu1 %v2660_v59 }
 0x38f   :  { %719 = vmatprep.subr.bf16.mxu1 %v2672_v61  ;;  %795 = vmatpush1.bf16.msra.mxu0 %v2480_v6 }
 0x390   :  { %796 = vmatprep.subr.bf16.mxu0 %v2486_v7 }
 0x392   :  { %720 = vmatpush1.bf16.msra.mxu1 %v2684_v63 }
 0x393   :  { %831 = vmatprep.subr.bf16.mxu1 %v2585_v46  ;;  %797 = vmatpush1.bf16.msra.mxu0 %v2495_v9 }
 0x394   :  { %798 = vmatprep.subr.bf16.mxu0 %v2501_v10 }
 0x397   :  { %799 = vmatpush1.bf16.msra.mxu0 %v2506_v11 }
 0x398   :  { %800 = vmatprep.subr.bf16.mxu0 %v2511_v12 }
 0x39b   :  { %801 = vmatpush1.bf16.msra.mxu0 %v2519_v13 }
 0x39c   :  { %802 = vmatprep.subr.bf16.mxu0 %v2525_v14 }
 0x39f   :  { %803 = vmatpush1.bf16.msra.mxu0 %v2531_v15 }
 0x3a0   :  { %804 = vmatprep.subr.bf16.mxu0 %v2537_v16 }
 0x3a3   :  { %805 = vmatpush1.bf16.msra.mxu0 %v2543_v17 }
 0x3a4   :  { %906 = vmatprep.subr.bf16.mxu0 %v2613_v51 }
 0x458   :  { %v631_v41 = vpop.f32.mrb[4].mxu1  ;;  %v672_v18 = vpop.f32.mrb[8].mxu0 }
 0x459   :  { %v682_v28 = vadd.f32 %v631_v41, %v163_v40  ;;  %v633_v44 = vpop.f32.mrb[5].mxu1  ;;  %v674_v26 = vpop.f32.mrb[9].mxu0 }
 0x45a   :  { %v635_v29 = vpop.f32.mrb[6].mxu1  ;;  %v676_v32 = vpop.f32.mrb[10].mxu0  ;;  %v683_v51 = vadd.f32 %v633_v44, %v164_v35 }
 0x45b   :  { %v2062_v34 = vmul.f32 -1.442695, %v682_v28  ;;  %v636_v36 = vpop.f32.mrb[7].mxu1  ;;  %v677_v42 = vpop.f32.mrb[11].mxu0 }
 0x45c   :  { %v2063_v41 = vmul.f32 -1.442695, %v683_v51 }
 0x45d   :  { %2188 = vpow2.f32 %v2062_v34 }
 0x45e   :  { %2190 = vtanh.f32 %v683_v51 }
 0x467   :  { %v2189_v17 = vpop.eup %2188 }
 0x468   :  { %v687_v23 = vadd.f32 1.0, %v2189_v17  ;;  %v2191_v21 = vpop.eup %2190 }
 0x46a   :  { %2192 = vrcp.f32 %v687_v23 }
 0x46b   :  { %2194 = vpow2.f32 %v2063_v41 }
 0x474   :  { %v2193_v27 = vpop.eup %2192 }
 0x475   :  { %v698_v40 = vmul.f32 %v2193_v27, %v2191_v21  ;;  %v2195_v28 = vpop.eup %2194  ;;  %v697_v32 = vmul.f32 %v2193_v27, %v2748_v33 }
 0x476   :  { %v694_v29 = vadd.f32 1.0, %v2195_v28 }
 0x477   :  { %700 = vrot.lane.b32.xlu0 %v698_v40, %s2398_s1 }
 0x478   :  { %2196 = vrcp.f32 %v694_v29 }
 0x482   :  { %v2197_v17 = vpop.eup %2196 }
 0x4e9   :  { %v701_v39 = vpop.permute.xlu0 %700 }
 0x4ea   :  { %v2825_v34 = vadd.f32 %v701_v39, %v697_v32 }
 0x4ec   :  { %2198 = vtanh.f32 %v2825_v34 }
 0x4f6   :  { %v2199_v35 = vpop.eup %2198 }
 0x4f7   :  { %v705_v23 = vmul.f32 %v2199_v35, %v2197_v17 }
 0x4f9   :  { %v706_v44 = vpack.c.bf16 %v705_v23, %v705_v23 }
 0x4fb   :  { %708 = vrot.lane.b32.xlu1 %v706_v44, %s2398_s1 }
 0x4ff   :  { %785 = vrot.lane.b32.xlu1 %v705_v23, %s2398_s1 }
 0x56d   :  { %v709_v51 = vpop.permute.xlu1 %708 }
 0x56e   :  { %2064 = vmatmul.mubr.msk.bf16.vlgmr.msra.gmra.mrb[8].mxu1 %vm506_vm0, %v709_v51 }
 0x56f   :  { %832 = vmatpush1.bf16.msra.mxu1 %v2590_v47  ;;  %863 = vmatprep.mubr.bf16.mxu1 %v3556_v1 }
 0x570   :  { %833 = vmatprep.subr.bf16.mxu1 %v2595_v48 }
 0x573   :  { %834 = vmatpush1.bf16.msra.mxu1 %v2602_v49 }
 0x574   :  { %835 = vmatprep.subr.bf16.mxu1 %v2608_v50 }
 0x577   :  { %836 = vmatpush1.bf16.msra.mxu1 %v2623_v53 }
 0x578   :  { %837 = vmatprep.subr.bf16.mxu1 %v2642_v56 }
 0x57b   :  { %838 = vmatpush1.bf16.msra.mxu1 %v2654_v58 }
 0x57c   :  { %839 = vmatprep.subr.bf16.mxu1 %v2666_v60 }
 0x57f   :  { %840 = vmatpush1.bf16.msra.mxu1 %v2678_v62 }
 0x580   :  { %841 = vmatprep.subr.bf16.mxu1 %v2690_v8 }
 0x583   :  { %842 = vmatpush1.bf16.msra.mxu1 %v2697_v19 }
 0x584   :  { %843 = vmatprep.subr.bf16.mxu1 %v2704_v20 }
 0x587   :  { %844 = vmatpush1.bf16.msra.mxu1 %v2711_v22 }
 0x588   :  { %845 = vmatprep.subr.bf16.mxu1 %v2717_v24 }
 0x58b   :  { %846 = vmatpush1.bf16.msra.mxu1 %v2723_v25 }
 0x58c   :  { %983 = vmatprep.subr.bf16.mxu1 %v2447_v0 }
 0x641   :  { %v747_v27 = vpop.f32.mrb[8].mxu1 }
 0x642   :  { %v748_v33 = vadd.f32 %v747_v27, %v672_v18  ;;  %v749_v36 = vpop.f32.mrb[9].mxu1  ;;  %v75_v18 = vld [vmem:[%s3524_s0 + $0x10] sm:$0xff] }
 0x643   :  { %v750_v42 = vadd.f32 %v749_v36, %v674_v26  ;;  %v751_v43 = vpop.f32.mrb[10].mxu1 }
 0x644   :  { %v754_v21 = vadd.f32 %v748_v33, %v2775_v45  ;;  %v752_v40 = vpop.f32.mrb[11].mxu1 }
 0x645   :  { %v755_v28 = vadd.f32 %v750_v42, %v2779_v37 }
 0x646   :  { %v2065_v41 = vmul.f32 -1.442695, %v754_v21  ;;  %v786_v21 = vpop.permute.xlu1 %785 }
 0x647   :  { %v2066_v26 = vmul.f32 -1.442695, %v755_v28 }
 0x648   :  { %2200 = vpow2.f32 %v2065_v41 }
 0x649   :  { %2202 = vtanh.f32 %v755_v28  ;;  %v3559_v28 = vld [vmem:[#allocation8_spill] sm:$0xff] }
 0x652   :  { %v2201_v29 = vpop.eup %2200 }
 0x653   :  { %v759_v32 = vadd.f32 1.0, %v2201_v29  ;;  %v2203_v39 = vpop.eup %2202 }
 0x655   :  { %2204 = vrcp.f32 %v759_v32  ;;  %v3560_v32 = vld [vmem:[#allocation6_spill] sm:$0xff] }
 0x656   :  { %2206 = vpow2.f32 %v2066_v26 }
 0x65f   :  { %v2205_v17 = vpop.eup %2204 }
 0x660   :  { %v770_v35 = vmul.f32 %v2205_v17, %v2203_v39  ;;  %v2207_v23 = vpop.eup %2206  ;;  %v769_v51 = vmul.f32 %v2205_v17, %v2786_v30  ;;  %v3558_v30 = vld [vmem:[#allocation5_spill] sm:$0xff]  ;;  %v3561_v17 = vld [vmem:[#allocation7_spill] sm:$0xff] }
 0x661   :  { %v766_v44 = vadd.f32 1.0, %v2207_v23 }
 0x662   :  { %772 = vrot.lane.b32.xlu0 %v770_v35, %s2398_s1 }
 0x663   :  { %2208 = vrcp.f32 %v766_v44 }
 0x666   :  { %94 = vperm.xlu0 %2102, %v75_v18  }
 0x66d   :  { %v2209_v36 = vpop.eup %2208 }
 0x6d4   :  { %v773_v27 = vpop.permute.xlu0 %772 }
 0x6d5   :  { %v2855_v33 = vadd.f32 %v773_v27, %v769_v51 }
 0x6d7   :  { %2210 = vtanh.f32 %v2855_v33 }
 0x6e1   :  { %v2211_v42 = vpop.eup %2210 }
 0x6e2   :  { %v2858_v43 = vmul.f32 %v2211_v42, %v2209_v36 }
 0x6e4   :  { %3557 = vst [vmem:[#allocation10_spill] sm:$0xff] %v2858_v43  ;;  %v788_v40 = vsel %vm506_vm0, %v786_v21, %v2858_v43 }
 0x6e5   :  { %v789_v41 = vpack.c.bf16 %v788_v40, %v788_v40  ;;  %v95_v29 = vpop.permute.xlu0 %94 }
 0x6e6   :  { %v137_v39 = vmul.f32 %v3560_v32, %v95_v29 }
 0x6e7   :  { %823 = vmatmul.mubr.bf16.vlgmr.msra.gmra.mrb[12].mxu0 %v789_v41  ;;  %864 = vmatmul.mubr.bf16.vlgmr.msra.gmra.mrb[12].mxu1 %v789_v41  ;;  %v138_v41 = vmul.f32 %v2568_v31, %v95_v29 }
 0x6e8   :  { %907 = vmatpush1.bf16.msra.mxu0 %v2618_v52  ;;  %938 = vmatprep.mubr.bf16.mxu0 %v3556_v1  ;;  %v165_v35 = vadd.f32 %v3561_v17, %v137_v39 }
 0x6e9   :  { %908 = vmatprep.subr.bf16.mxu0 %v2629_v54  ;;  %984 = vmatpush1.bf16.msra.mxu1 %v2454_v2  ;;  %v166_v43 = vadd.f32 %v2572_v38, %v138_v41 }
 0x6ea   :  { %985 = vmatprep.subr.bf16.mxu1 %v2462_v3  ;;  %1015 = vmatprep.mubr.bf16.mxu1 %v3556_v1 }
 0x6ec   :  { %909 = vmatpush1.bf16.msra.mxu0 %v2636_v55 }
 0x6ed   :  { %910 = vmatprep.subr.bf16.mxu0 %v2648_v57  ;;  %986 = vmatpush1.bf16.msra.mxu1 %v2468_v4 }
 0x6ee   :  { %987 = vmatprep.subr.bf16.mxu1 %v2474_v5 }
 0x6f0   :  { %911 = vmatpush1.bf16.msra.mxu0 %v2660_v59 }
 0x6f1   :  { %912 = vmatprep.subr.bf16.mxu0 %v2672_v61  ;;  %988 = vmatpush1.bf16.msra.mxu1 %v2480_v6 }
 0x6f2   :  { %989 = vmatprep.subr.bf16.mxu1 %v2486_v7 }
 0x6f4   :  { %913 = vmatpush1.bf16.msra.mxu0 %v2684_v63 }
 0x6f5   :  { %1024 = vmatprep.subr.bf16.mxu0 %v2585_v46  ;;  %990 = vmatpush1.bf16.msra.mxu1 %v2495_v9 }
 0x6f6   :  { %991 = vmatprep.subr.bf16.mxu1 %v2501_v10 }
 0x6f9   :  { %992 = vmatpush1.bf16.msra.mxu1 %v2506_v11 }
 0x6fa   :  { %993 = vmatprep.subr.bf16.mxu1 %v2511_v12 }
 0x6fd   :  { %994 = vmatpush1.bf16.msra.mxu1 %v2519_v13 }
 0x6fe   :  { %995 = vmatprep.subr.bf16.mxu1 %v2525_v14 }
 0x701   :  { %996 = vmatpush1.bf16.msra.mxu1 %v2531_v15 }
 0x702   :  { %997 = vmatprep.subr.bf16.mxu1 %v2537_v16 }
 0x705   :  { %998 = vmatpush1.bf16.msra.mxu1 %v3558_v30 }
 0x706   :  { %1099 = vmatprep.subr.bf16.mxu1 %v3559_v28 }
 0x7ba   :  { %v824_v18 = vpop.f32.mrb[12].mxu0  ;;  %v865_v26 = vpop.f32.mrb[12].mxu1 }
 0x7bb   :  { %v875_v23 = vadd.f32 %v824_v18, %v165_v35  ;;  %v826_v44 = vpop.f32.mrb[13].mxu0  ;;  %v867_v51 = vpop.f32.mrb[13].mxu1 }
 0x7bc   :  { %v828_v27 = vpop.f32.mrb[14].mxu0  ;;  %v869_v36 = vpop.f32.mrb[14].mxu1  ;;  %v876_v28 = vadd.f32 %v826_v44, %v166_v43 }
 0x7bd   :  { %v2067_v42 = vmul.f32 -1.442695, %v875_v23  ;;  %v829_v21 = vpop.f32.mrb[15].mxu0  ;;  %v870_v40 = vpop.f32.mrb[15].mxu1 }
 0x7be   :  { %v2068_v18 = vmul.f32 -1.442695, %v876_v28 }
 0x7bf   :  { %2212 = vpow2.f32 %v2067_v42 }
 0x7c0   :  { %2214 = vtanh.f32 %v876_v28 }
 0x7c9   :  { %v2213_v30 = vpop.eup %2212 }
 0x7ca   :  { %v880_v32 = vadd.f32 1.0, %v2213_v30  ;;  %v2215_v39 = vpop.eup %2214 }
 0x7cc   :  { %2216 = vrcp.f32 %v880_v32 }
 0x7cd   :  { %2218 = vpow2.f32 %v2068_v18 }
 0x7d6   :  { %v2217_v17 = vpop.eup %2216 }
 0x7d7   :  { %v891_v35 = vmul.f32 %v2217_v17, %v2215_v39  ;;  %v2219_v23 = vpop.eup %2218  ;;  %v890_v36 = vmul.f32 %v2217_v17, %v2825_v34 }
 0x7d8   :  { %v887_v27 = vadd.f32 1.0, %v2219_v23 }
 0x7d9   :  { %893 = vrot.lane.b32.xlu1 %v891_v35, %s2398_s1 }
 0x7da   :  { %2220 = vrcp.f32 %v887_v27 }
 0x7e4   :  { %v2221_v43 = vpop.eup %2220 }
 0x84b   :  { %v894_v42 = vpop.permute.xlu1 %893 }
 0x84c   :  { %v2894_v29 = vadd.f32 %v894_v42, %v890_v36 }
 0x84e   :  { %2222 = vtanh.f32 %v2894_v29 }
 0x858   :  { %v2223_v30 = vpop.eup %2222 }
 0x859   :  { %v898_v32 = vmul.f32 %v2223_v30, %v2221_v43 }
 0x85b   :  { %v899_v44 = vpack.c.bf16 %v898_v32, %v898_v32 }
 0x85d   :  { %901 = vrot.lane.b32.xlu0 %v899_v44, %s2398_s1 }
 0x861   :  { %978 = vrot.lane.b32.xlu0 %v898_v32, %s2398_s1 }
 0x8cf   :  { %v902_v28 = vpop.permute.xlu0 %901 }
 0x8d0   :  { %2069 = vmatmul.mubr.msk.bf16.vlgmr.msra.gmra.mrb[16].mxu0 %vm506_vm0, %v902_v28 }
 0x8d1   :  { %1025 = vmatpush1.bf16.msra.mxu0 %v2590_v47  ;;  %1056 = vmatprep.mubr.bf16.mxu0 %v3556_v1 }
 0x8d2   :  { %1026 = vmatprep.subr.bf16.mxu0 %v2595_v48 }
 0x8d5   :  { %1027 = vmatpush1.bf16.msra.mxu0 %v2602_v49 }
 0x8d6   :  { %1028 = vmatprep.subr.bf16.mxu0 %v2608_v50 }
 0x8d9   :  { %1029 = vmatpush1.bf16.msra.mxu0 %v2623_v53 }
 0x8da   :  { %1030 = vmatprep.subr.bf16.mxu0 %v2642_v56 }
 0x8dd   :  { %1031 = vmatpush1.bf16.msra.mxu0 %v2654_v58 }
 0x8de   :  { %1032 = vmatprep.subr.bf16.mxu0 %v2666_v60 }
 0x8e1   :  { %1033 = vmatpush1.bf16.msra.mxu0 %v2678_v62 }
 0x8e2   :  { %1034 = vmatprep.subr.bf16.mxu0 %v2690_v8 }
 0x8e5   :  { %1035 = vmatpush1.bf16.msra.mxu0 %v2697_v19 }
 0x8e6   :  { %1036 = vmatprep.subr.bf16.mxu0 %v2704_v20 }
 0x8e9   :  { %1037 = vmatpush1.bf16.msra.mxu0 %v2711_v22 }
 0x8ea   :  { %1038 = vmatprep.subr.bf16.mxu0 %v2717_v24 }
 0x8ed   :  { %1039 = vmatpush1.bf16.msra.mxu0 %v2723_v25 }
 0x8ee   :  { %1176 = vmatprep.subr.bf16.mxu0 %v2447_v0  ;;  %v76_v0 = vld [vmem:[%s3524_s0 + $0x18] sm:$0xff] }
 0x9a3   :  { %v940_v34 = vpop.f32.mrb[16].mxu0 }
 0x9a4   :  { %v941_v17 = vadd.f32 %v940_v34, %v865_v26  ;;  %v942_v21 = vpop.f32.mrb[17].mxu0 }
 0x9a5   :  { %v943_v40 = vadd.f32 %v942_v21, %v867_v51  ;;  %v944_v41 = vpop.f32.mrb[18].mxu0 }
 0x9a6   :  { %v947_v39 = vadd.f32 %v941_v17, %v2775_v45  ;;  %v945_v35 = vpop.f32.mrb[19].mxu0  ;;  %v979_v41 = vpop.permute.xlu0 %978 }
 0x9a7   :  { %v948_v23 = vadd.f32 %v943_v40, %v2779_v37 }
 0x9a8   :  { %v2070_v18 = vmul.f32 -1.442695, %v947_v39 }
 0x9a9   :  { %v2071_v26 = vmul.f32 -1.442695, %v948_v23 }
 0x9aa   :  { %2224 = vpow2.f32 %v2070_v18 }
 0x9ab   :  { %2226 = vtanh.f32 %v948_v23 }
 0x9b4   :  { %v2225_v27 = vpop.eup %2224 }
 0x9b5   :  { %v952_v36 = vadd.f32 1.0, %v2225_v27  ;;  %v2227_v42 = vpop.eup %2226 }
 0x9b7   :  { %2228 = vrcp.f32 %v952_v36 }
 0x9b8   :  { %2230 = vpow2.f32 %v2071_v26 }
 0x9c1   :  { %v2229_v43 = vpop.eup %2228 }
 0x9c2   :  { %v963_v30 = vmul.f32 %v2229_v43, %v2227_v42  ;;  %v2231_v51 = vpop.eup %2230  ;;  %v962_v44 = vmul.f32 %v2229_v43, %v2855_v33 }
 0x9c3   :  { %v959_v32 = vadd.f32 1.0, %v2231_v51 }
 0x9c4   :  { %965 = vrot.lane.b32.xlu1 %v963_v30, %s2398_s1 }
 0x9c5   :  { %2232 = vrcp.f32 %v959_v32 }
 0x9c8   :  { %99 = vperm.xlu1 %2103, %v76_v0  }
 0x9cf   :  { %v2233_v17 = vpop.eup %2232 }
 0xa36   :  { %v966_v28 = vpop.permute.xlu1 %965 }
 0xa37   :  { %v2924_v34 = vadd.f32 %v966_v28, %v962_v44 }
 0xa39   :  { %2234 = vtanh.f32 %v2924_v34 }
 0xa43   :  { %v2235_v21 = vpop.eup %2234 }
 0xa44   :  { %v2927_v40 = vmul.f32 %v2235_v21, %v2233_v17 }
 0xa46   :  { %3562 = vst [vmem:[#allocation11_spill] sm:$0xff] %v2927_v40  ;;  %v981_v39 = vsel %vm506_vm0, %v979_v41, %v2927_v40 }
 0xa47   :  { %v982_v35 = vpack.c.bf16 %v981_v39, %v981_v39 }
 0xa49   :  { %1016 = vmatmul.mubr.bf16.vlgmr.msra.gmra.mrb[16].mxu1 %v982_v35  ;;  %1057 = vmatmul.mubr.bf16.vlgmr.msra.gmra.mrb[20].mxu0 %v982_v35 }
 0xa4a   :  { %1100 = vmatpush1.bf16.msra.mxu1 %v2618_v52  ;;  %1131 = vmatprep.mubr.bf16.mxu1 %v3556_v1 }
 0xa4b   :  { %1101 = vmatprep.subr.bf16.mxu1 %v2629_v54  ;;  %1177 = vmatpush1.bf16.msra.mxu0 %v2454_v2  ;;  %v3563_v2 = vld [vmem:[#allocation5_spill] sm:$0xff] }
 0xa4c   :  { %1178 = vmatprep.subr.bf16.mxu0 %v2462_v3  ;;  %1208 = vmatprep.mubr.bf16.mxu0 %v3556_v1  ;;  %v3564_v3 = vld [vmem:[#allocation8_spill] sm:$0xff] }
 0xa4e   :  { %1102 = vmatpush1.bf16.msra.mxu1 %v2636_v55 }
 0xa4f   :  { %1103 = vmatprep.subr.bf16.mxu1 %v2648_v57  ;;  %1179 = vmatpush1.bf16.msra.mxu0 %v2468_v4  ;;  %v100_v4 = vpop.permute.xlu1 %99 }
 0xa50   :  { %1180 = vmatprep.subr.bf16.mxu0 %v2474_v5  ;;  %v3565_v5 = vld [vmem:[#allocation6_spill] sm:$0xff] }
 0xa52   :  { %1104 = vmatpush1.bf16.msra.mxu1 %v2660_v59 }
 0xa53   :  { %1105 = vmatprep.subr.bf16.mxu1 %v2672_v61  ;;  %1181 = vmatpush1.bf16.msra.mxu0 %v2480_v6  ;;  %v139_v6 = vmul.f32 %v3565_v5, %v100_v4 }
 0xa54   :  { %1182 = vmatprep.subr.bf16.mxu0 %v2486_v7  ;;  %v3566_v7 = vld [vmem:[#allocation7_spill] sm:$0xff] }
 0xa56   :  { %1106 = vmatpush1.bf16.msra.mxu1 %v2684_v63 }
 0xa57   :  { %1217 = vmatprep.subr.bf16.mxu1 %v2585_v46  ;;  %1183 = vmatpush1.bf16.msra.mxu0 %v2495_v9  ;;  %v167_v9 = vadd.f32 %v3566_v7, %v139_v6 }
 0xa58   :  { %1184 = vmatprep.subr.bf16.mxu0 %v2501_v10 }
 0xa5b   :  { %1185 = vmatpush1.bf16.msra.mxu0 %v2506_v11 }
 0xa5c   :  { %1186 = vmatprep.subr.bf16.mxu0 %v2511_v12 }
 0xa5f   :  { %1187 = vmatpush1.bf16.msra.mxu0 %v2519_v13 }
 0xa60   :  { %1188 = vmatprep.subr.bf16.mxu0 %v2525_v14 }
 0xa63   :  { %1189 = vmatpush1.bf16.msra.mxu0 %v2531_v15 }
 0xa64   :  { %1190 = vmatprep.subr.bf16.mxu0 %v2537_v16  ;;  %v140_v16 = vmul.f32 %v2568_v31, %v100_v4 }
 0xa66   :  { %v168_v27 = vadd.f32 %v2572_v38, %v140_v16  ;;  %v3065_v16 = vld [vmem:[%s3523_s3 + $0x84] ss:$16 sps:$4 sm:$0xff]  }
 0xa67   :  { %1191 = vmatpush1.bf16.msra.mxu0 %v3563_v2 }
 0xa68   :  { %1292 = vmatprep.subr.bf16.mxu0 %v3564_v3 }
 0xb1c   :  { %v1017_v10 = vpop.f32.mrb[16].mxu1  ;;  %v1058_v11 = vpop.f32.mrb[20].mxu0 }
 0xb1d   :  { %v1068_v12 = vadd.f32 %v1017_v10, %v167_v9  ;;  %v1019_v46 = vpop.f32.mrb[17].mxu1  ;;  %v1060_v13 = vpop.f32.mrb[21].mxu0 }
 0xb1e   :  { %v1021_v33 = vpop.f32.mrb[18].mxu1  ;;  %v1062_v14 = vpop.f32.mrb[22].mxu0  ;;  %v1069_v36 = vadd.f32 %v1019_v46, %v168_v27  ;;  %v3077_v27 = vld [vmem:[%s3523_s3 + $0xa4] ss:$16 sps:$4 sm:$0xff]  }
 0xb1f   :  { %v2072_v18 = vmul.f32 -1.442695, %v1068_v12  ;;  %v1022_v15 = vpop.f32.mrb[19].mxu1  ;;  %v1063_v23 = vpop.f32.mrb[23].mxu0 }
 0xb20   :  { %v2073_v51 = vmul.f32 -1.442695, %v1069_v36  ;;  %v3017_v23 = vld [vmem:[%s3523_s3 + $0x24] ss:$16 sps:$4 sm:$0xff]  }
 0xb21   :  { %2236 = vpow2.f32 %v2072_v18 }
 0xb22   :  { %2238 = vtanh.f32 %v1069_v36  ;;  %v3083_v36 = vld [vmem:[%s3523_s3 + $0xa0] ss:$16 sps:$4 sm:$0xff]  }
 0xb2b   :  { %v2237_v42 = vpop.eup %2236 }
 0xb2c   :  { %v1073_v43 = vadd.f32 1.0, %v2237_v42  ;;  %v2239_v30 = vpop.eup %2238  ;;  %v3089_v42 = vld [vmem:[%s3523_s3 + $0xc4] ss:$16 sps:$4 sm:$0xff]  }
 0xb2e   :  { %2240 = vrcp.f32 %v1073_v43  ;;  %v3095_v43 = vld [vmem:[%s3523_s3 + $0xc0] ss:$16 sps:$4 sm:$0xff]  }
 0xb2f   :  { %2242 = vpow2.f32 %v2073_v51 }
 0xb38   :  { %v2241_v0 = vpop.eup %2240 }
 0xb39   :  { %v1084_v26 = vmul.f32 %v2241_v0, %v2239_v30  ;;  %v2243_v32 = vpop.eup %2242  ;;  %v1083_v28 = vmul.f32 %v2241_v0, %v2894_v29  ;;  %v77_v29 = vld [vmem:[%s3524_s0 + $0x20] sm:$0xff] }
 0xb3a   :  { %v1080_v44 = vadd.f32 1.0, %v2243_v32  ;;  %v3101_v30 = vld [vmem:[%s3523_s3 + $0xe4] ss:$16 sps:$4 sm:$0xff]   ;;  %v3107_v0 = vld [vmem:[%s3523_s3 + $0xe0] ss:$16 sps:$4 sm:$0xff]  }
 0xb3b   :  { %1086 = vrot.lane.b32.xlu0 %v1084_v26, %s2398_s1  ;;  %3568 = vst [vmem:[#allocation8_spill] sm:$0xff] %v3107_v0  ;;  %v3113_v26 = vld [vmem:[%s3527_s4 + $0x4] ss:$8 sps:$4 sm:$0xff]  }
 0xb3c   :  { %2244 = vrcp.f32 %v1080_v44  ;;  %3569 = vst [vmem:[#allocation12_spill] sm:$0xff] %v3113_v26 }
 0xb46   :  { %v2245_v41 = vpop.eup %2244 }
 0xbad   :  { %v1087_v17 = vpop.permute.xlu0 %1086 }
 0xbae   :  { %v2963_v21 = vadd.f32 %v1087_v17, %v1083_v28 }
 0xbb0   :  { %2246 = vtanh.f32 %v2963_v21 }
 0xbba   :  { %v2247_v39 = vpop.eup %2246 }
 0xbbb   :  { %v1091_v35 = vmul.f32 %v2247_v39, %v2245_v41 }
 0xbbd   :  { %v1092_v2 = vpack.c.bf16 %v1091_v35, %v1091_v35 }
 0xbbf   :  { %1094 = vrot.lane.b32.xlu1 %v1092_v2, %s2398_s1 }
 0xbc3   :  { %1171 = vrot.lane.b32.xlu1 %v1091_v35, %s2398_s1 }
 0xc31   :  { %v1095_v3 = vpop.permute.xlu1 %1094 }
 0xc32   :  { %2074 = vmatmul.mubr.msk.bf16.vlgmr.msra.gmra.mrb[20].mxu1 %vm506_vm0, %v1095_v3 }
 0xc33   :  { %1218 = vmatpush1.bf16.msra.mxu1 %v2590_v47  ;;  %1249 = vmatprep.mubr.bf16.mxu1 %v3556_v1  ;;  %v2988_v47 = vld [vmem:[%s3523_s3 + $0x4] ss:$16 sps:$4 sm:$0xff]  }
 0xc34   :  { %1219 = vmatprep.subr.bf16.mxu1 %v2595_v48 }
 0xc35   :  { %v1172_v14 = vpop.permute.xlu1 %1171 }
 0xc37   :  { %1220 = vmatpush1.bf16.msra.mxu1 %v2602_v49 }
 0xc38   :  { %1221 = vmatprep.subr.bf16.mxu1 %v2608_v50 }
 0xc3b   :  { %1222 = vmatpush1.bf16.msra.mxu1 %v2623_v53 }
 0xc3c   :  { %1223 = vmatprep.subr.bf16.mxu1 %v2642_v56 }
 0xc3f   :  { %1224 = vmatpush1.bf16.msra.mxu1 %v2654_v58 }
 0xc40   :  { %1225 = vmatprep.subr.bf16.mxu1 %v2666_v60 }
 0xc43   :  { %1226 = vmatpush1.bf16.msra.mxu1 %v2678_v62 }
 0xc44   :  { %1227 = vmatprep.subr.bf16.mxu1 %v2690_v8 }
 0xc47   :  { %1228 = vmatpush1.bf16.msra.mxu1 %v2697_v19 }
 0xc48   :  { %1229 = vmatprep.subr.bf16.mxu1 %v2704_v20 }
 0xc4b   :  { %1230 = vmatpush1.bf16.msra.mxu1 %v2711_v22 }
 0xc4c   :  { %1231 = vmatprep.subr.bf16.mxu1 %v2717_v24 }
 0xc4f   :  { %1232 = vmatpush1.bf16.msra.mxu1 %v2723_v25 }
 0xc50   :  { %1369 = vmatprep.subr.bf16.mxu1 %v2988_v47 }
 0xd05   :  { %v1133_v48 = vpop.f32.mrb[20].mxu1 }
 0xd06   :  { %v1134_v49 = vadd.f32 %v1133_v48, %v1058_v11  ;;  %v1135_v50 = vpop.f32.mrb[21].mxu1 }
 0xd07   :  { %v1136_v53 = vadd.f32 %v1135_v50, %v1060_v13  ;;  %v1137_v56 = vpop.f32.mrb[22].mxu1 }
 0xd08   :  { %v1140_v58 = vadd.f32 %v1134_v49, %v2775_v45  ;;  %v1138_v60 = vpop.f32.mrb[23].mxu1 }
 0xd09   :  { %v1141_v8 = vadd.f32 %v1136_v53, %v2779_v37 }
 0xd0a   :  { %v2075_v62 = vmul.f32 -1.442695, %v1140_v58 }
 0xd0b   :  { %v2076_v4 = vmul.f32 -1.442695, %v1141_v8 }
 0xd0c   :  { %2248 = vpow2.f32 %v2075_v62 }
 0xd0d   :  { %2250 = vtanh.f32 %v1141_v8 }
 0xd16   :  { %v2249_v19 = vpop.eup %2248 }
 0xd17   :  { %v1145_v20 = vadd.f32 1.0, %v2249_v19  ;;  %v2251_v22 = vpop.eup %2250 }
 0xd19   :  { %2252 = vrcp.f32 %v1145_v20 }
 0xd1a   :  { %2254 = vpow2.f32 %v2076_v4 }
 0xd23   :  { %v2253_v24 = vpop.eup %2252 }
 0xd24   :  { %v1156_v25 = vmul.f32 %v2253_v24, %v2251_v22  ;;  %v2255_v6 = vpop.eup %2254  ;;  %v1155_v10 = vmul.f32 %v2253_v24, %v2924_v34  ;;  %v3011_v34 = vld [vmem:[%s3523_s3] ss:$16 sps:$4 sm:$0xff]  }
 0xd25   :  { %v1152_v9 = vadd.f32 1.0, %v2255_v6 }
 0xd26   :  { %1158 = vrot.lane.b32.xlu0 %v1156_v25, %s2398_s1 }
 0xd27   :  { %2256 = vrcp.f32 %v1152_v9 }
 0xd2a   :  { %104 = vperm.xlu0 %2102, %v77_v29  }
 0xd31   :  { %v2257_v46 = vpop.eup %2256 }
 0xd98   :  { %v1159_v11 = vpop.permute.xlu0 %1158 }
 0xd99   :  { %v2998_v12 = vadd.f32 %v1159_v11, %v1155_v10 }
 0xd9b   :  { %2258 = vtanh.f32 %v2998_v12 }
 0xda5   :  { %v2259_v13 = vpop.eup %2258 }
 0xda6   :  { %v3001_v33 = vmul.f32 %v2259_v13, %v2257_v46 }
 0xda8   :  { %3567 = vst [vmem:[#allocation5_spill] sm:$0xff] %v3001_v33  ;;  %v1174_v18 = vsel %vm506_vm0, %v1172_v14, %v3001_v33  ;;  %v3142_v14 = vld [vmem:[%s3523_s3 + $0x2c] ss:$16 sps:$4 sm:$0xff]  }
 0xda9   :  { %v1175_v15 = vpack.c.bf16 %v1174_v18, %v1174_v18  ;;  %v105_v51 = vpop.permute.xlu0 %104  ;;  %v3148_v18 = vld [vmem:[%s3523_s3 + $0x28] ss:$16 sps:$4 sm:$0xff]  }
 0xdaa   :  { %v141_v32 = vmul.f32 %v3565_v5, %v105_v51  ;;  %v142_v53 = vmul.f32 %v2568_v31, %v105_v51  ;;  %v3160_v51 = vld [vmem:[%s3523_s3 + $0x48] ss:$16 sps:$4 sm:$0xff]  }
 0xdab   :  { %1209 = vmatmul.mubr.bf16.vlgmr.msra.gmra.mrb[24].mxu0 %v1175_v15  ;;  %1250 = vmatmul.mubr.bf16.vlgmr.msra.gmra.mrb[24].mxu1 %v1175_v15  ;;  %v3154_v15 = vld [vmem:[%s3523_s3 + $0x4c] ss:$16 sps:$4 sm:$0xff]  }
 0xdac   :  { %1293 = vmatpush1.bf16.msra.mxu0 %v2618_v52  ;;  %1324 = vmatprep.mubr.bf16.mxu0 %v3556_v1  ;;  %v3026_v52 = vld [vmem:[%s3523_s3 + $0x20] ss:$16 sps:$4 sm:$0xff]   ;;  %v169_v44 = vadd.f32 %v3566_v7, %v141_v32  ;;  %v170_v56 = vadd.f32 %v2572_v38, %v142_v53  ;;  %v3166_v32 = vld [vmem:[%s3523_s3 + $0x6c] ss:$16 sps:$4 sm:$0xff]  }
 0xdad   :  { %1294 = vmatprep.subr.bf16.mxu0 %v2629_v54  ;;  %1370 = vmatpush1.bf16.msra.mxu1 %v3011_v34  ;;  %v3032_v54 = vld [vmem:[%s3523_s3 + $0x44] ss:$16 sps:$4 sm:$0xff]  }
 0xdae   :  { %1371 = vmatprep.subr.bf16.mxu1 %v3017_v23  ;;  %1401 = vmatprep.mubr.bf16.mxu1 %v3556_v1 }
 0xdb0   :  { %1295 = vmatpush1.bf16.msra.mxu0 %v2636_v55  ;;  %v3040_v55 = vld [vmem:[%s3523_s3 + $0x40] ss:$16 sps:$4 sm:$0xff]  }
 0xdb1   :  { %1296 = vmatprep.subr.bf16.mxu0 %v2648_v57  ;;  %1372 = vmatpush1.bf16.msra.mxu1 %v3026_v52  ;;  %v3046_v57 = vld [vmem:[%s3523_s3 + $0x64] ss:$16 sps:$4 sm:$0xff]  }
 0xdb2   :  { %1373 = vmatprep.subr.bf16.mxu1 %v3032_v54 }
 0xdb4   :  { %1297 = vmatpush1.bf16.msra.mxu0 %v2660_v59  ;;  %v3053_v59 = vld [vmem:[%s3523_s3 + $0xc] ss:$16 sps:$4 sm:$0xff]  }
 0xdb5   :  { %1298 = vmatprep.subr.bf16.mxu0 %v2672_v61  ;;  %1374 = vmatpush1.bf16.msra.mxu1 %v3040_v55  ;;  %v3059_v61 = vld [vmem:[%s3523_s3 + $0x60] ss:$16 sps:$4 sm:$0xff]  }
 0xdb6   :  { %1375 = vmatprep.subr.bf16.mxu1 %v3046_v57 }
 0xdb8   :  { %1299 = vmatpush1.bf16.msra.mxu0 %v2684_v63  ;;  %v3071_v63 = vld [vmem:[%s3523_s3 + $0x80] ss:$16 sps:$4 sm:$0xff]  }
 0xdb9   :  { %1410 = vmatprep.subr.bf16.mxu0 %v3053_v59  ;;  %1376 = vmatpush1.bf16.msra.mxu1 %v3059_v61 }
 0xdba   :  { %1377 = vmatprep.subr.bf16.mxu1 %v3065_v16 }
 0xdbd   :  { %1378 = vmatpush1.bf16.msra.mxu1 %v3071_v63 }
 0xdbe   :  { %1379 = vmatprep.subr.bf16.mxu1 %v3077_v27 }
 0xdc1   :  { %1380 = vmatpush1.bf16.msra.mxu1 %v3083_v36 }
 0xdc2   :  { %1381 = vmatprep.subr.bf16.mxu1 %v3089_v42 }
 0xdc5   :  { %1382 = vmatpush1.bf16.msra.mxu1 %v3095_v43 }
 0xdc6   :  { %1383 = vmatprep.subr.bf16.mxu1 %v3101_v30 }
 0xdc9   :  { %1384 = vmatpush1.bf16.msra.mxu1 %v3107_v0 }
 0xdca   :  { %1485 = vmatprep.subr.bf16.mxu1 %v3113_v26 }
 0xe7e   :  { %v1210_v28 = vpop.f32.mrb[24].mxu0  ;;  %v3118_v17 = vpop.f32.mrb[24].mxu1 }
 0xe7f   :  { %v1261_v41 = vadd.f32 %v1210_v28, %v169_v44  ;;  %v1212_v39 = vpop.f32.mrb[25].mxu0  ;;  %v3120_v35 = vpop.f32.mrb[25].mxu1  ;;  %v3172_v44 = vld [vmem:[%s3523_s3 + $0x68] ss:$16 sps:$4 sm:$0xff]   ;;  %v3178_v28 = vld [vmem:[%s3523_s3 + $0x8c] ss:$16 sps:$4 sm:$0xff]  }
 0xe80   :  { %v1214_v2 = vpop.f32.mrb[26].mxu0  ;;  %v1255_v3 = vpop.f32.mrb[26].mxu1  ;;  %v1262_v58 = vadd.f32 %v1212_v39, %v170_v56  ;;  %v3190_v39 = vld [vmem:[%s3523_s3 + $0xac] ss:$16 sps:$4 sm:$0xff]  }
 0xe81   :  { %v2077_v48 = vmul.f32 -1.442695, %v1261_v41  ;;  %v1215_v49 = vpop.f32.mrb[27].mxu0  ;;  %v1256_v50 = vpop.f32.mrb[27].mxu1  ;;  %v3184_v41 = vld [vmem:[%s3523_s3 + $0x88] ss:$16 sps:$4 sm:$0xff]  }
 0xe82   :  { %v2078_v22 = vmul.f32 -1.442695, %v1262_v58  ;;  %v3196_v2 = vld [vmem:[%s3523_s3 + $0xa8] ss:$16 sps:$4 sm:$0xff]   ;;  %v3202_v3 = vld [vmem:[%s3523_s3 + $0xcc] ss:$16 sps:$4 sm:$0xff]  }
 0xe83   :  { %2260 = vpow2.f32 %v2077_v48  ;;  %v3208_v48 = vld [vmem:[%s3523_s3 + $0xc8] ss:$16 sps:$4 sm:$0xff]   ;;  %v3214_v49 = vld [vmem:[%s3523_s3 + $0xec] ss:$16 sps:$4 sm:$0xff]  }
 0xe84   :  { %2262 = vtanh.f32 %v1262_v58  ;;  %v3220_v50 = vld [vmem:[%s3523_s3 + $0xe8] ss:$16 sps:$4 sm:$0xff]  }
 0xe8d   :  { %v2261_v60 = vpop.eup %2260 }
 0xe8e   :  { %v1266_v62 = vadd.f32 1.0, %v2261_v60  ;;  %v2263_v8 = vpop.eup %2262 }
 0xe90   :  { %2264 = vrcp.f32 %v1266_v62 }
 0xe91   :  { %2266 = vpow2.f32 %v2078_v22 }
 0xe9a   :  { %v2265_v19 = vpop.eup %2264 }
 0xe9b   :  { %v1277_v20 = vmul.f32 %v2265_v19, %v2263_v8  ;;  %v2267_v24 = vpop.eup %2266  ;;  %v1276_v29 = vmul.f32 %v2265_v19, %v2963_v21  ;;  %v3135_v21 = vld [vmem:[%s3523_s3 + $0x8] ss:$16 sps:$4 sm:$0xff]  }
 0xe9c   :  { %v1273_v25 = vadd.f32 1.0, %v2267_v24 }
 0xe9d   :  { %1279 = vrot.lane.b32.xlu1 %v1277_v20, %s2398_s1 }
 0xe9e   :  { %2268 = vrcp.f32 %v1273_v25 }
 0xea8   :  { %v2269_v9 = vpop.eup %2268 }
 0xf0f   :  { %v1280_v4 = vpop.permute.xlu1 %1279 }
 0xf10   :  { %v3126_v6 = vadd.f32 %v1280_v4, %v1276_v29 }
 0xf12   :  { %2270 = vtanh.f32 %v3126_v6 }
 0xf1c   :  { %v2271_v10 = vpop.eup %2270 }
 0xf1d   :  { %v1284_v11 = vmul.f32 %v2271_v10, %v2269_v9 }
 0xf1f   :  { %v1285_v46 = vpack.c.bf16 %v1284_v11, %v1284_v11 }
 0xf21   :  { %1287 = vrot.lane.b32.xlu0 %v1285_v46, %s2398_s1 }
 0xf25   :  { %1364 = vrot.lane.b32.xlu0 %v1284_v11, %s2398_s1 }
 0xf93   :  { %v1288_v13 = vpop.permute.xlu0 %1287 }
 0xf94   :  { %2079 = vmatmul.mubr.msk.bf16.vlgmr.msra.gmra.mrb[28].mxu0 %vm506_vm0, %v1288_v13 }
 0xf95   :  { %1411 = vmatpush1.bf16.msra.mxu0 %v3135_v21  ;;  %1442 = vmatprep.mubr.bf16.mxu0 %v3556_v1 }
 0xf96   :  { %1412 = vmatprep.subr.bf16.mxu0 %v3142_v14 }
 0xf99   :  { %1413 = vmatpush1.bf16.msra.mxu0 %v3148_v18 }
 0xf9a   :  { %1414 = vmatprep.subr.bf16.mxu0 %v3154_v15 }
 0xf9d   :  { %1415 = vmatpush1.bf16.msra.mxu0 %v3160_v51 }
 0xf9e   :  { %1416 = vmatprep.subr.bf16.mxu0 %v3166_v32 }
 0xfa1   :  { %1417 = vmatpush1.bf16.msra.mxu0 %v3172_v44 }
 0xfa2   :  { %1418 = vmatprep.subr.bf16.mxu0 %v3178_v28 }
 0xfa5   :  { %1419 = vmatpush1.bf16.msra.mxu0 %v3184_v41 }
 0xfa6   :  { %1420 = vmatprep.subr.bf16.mxu0 %v3190_v39 }
 0xfa9   :  { %1421 = vmatpush1.bf16.msra.mxu0 %v3196_v2 }
 0xfaa   :  { %1422 = vmatprep.subr.bf16.mxu0 %v3202_v3 }
 0xfad   :  { %1423 = vmatpush1.bf16.msra.mxu0 %v3208_v48 }
 0xfae   :  { %1424 = vmatprep.subr.bf16.mxu0 %v3214_v49 }
 0xfb1   :  { %1425 = vmatpush1.bf16.msra.mxu0 %v3220_v50 }
 0xfb2   :  { %1562 = vmatprep.subr.bf16.mxu0 %v2988_v47 }
0x1067   :  { %v1326_v53 = vpop.f32.mrb[28].mxu0 }
0x1068   :  { %v1327_v56 = vadd.f32 %v1326_v53, %v3118_v17  ;;  %v1328_v58 = vpop.f32.mrb[29].mxu0  ;;  %v78_v17 = vld [vmem:[%s3524_s0 + $0x28] sm:$0xff] }
0x1069   :  { %v1329_v60 = vadd.f32 %v1328_v58, %v3120_v35  ;;  %v1330_v62 = vpop.f32.mrb[30].mxu0 }
0x106a   :  { %v1333_v8 = vadd.f32 %v1327_v56, %v2775_v45  ;;  %v1331_v19 = vpop.f32.mrb[31].mxu0  ;;  %v1365_v62 = vpop.permute.xlu0 %1364 }
0x106b   :  { %v1334_v22 = vadd.f32 %v1329_v60, %v2779_v37 }
0x106c   :  { %v2080_v20 = vmul.f32 -1.442695, %v1333_v8 }
0x106d   :  { %v2081_v35 = vmul.f32 -1.442695, %v1334_v22 }
0x106e   :  { %2272 = vpow2.f32 %v2080_v20  ;;  %v3250_v20 = vld [vmem:[%s3527_s4 + $0x14] ss:$8 sps:$4 sm:$0xff]  }
0x106f   :  { %2274 = vtanh.f32 %v1334_v22  ;;  %v3259_v22 = vld [vmem:[%s3527_s4 + $0x10] ss:$8 sps:$4 sm:$0xff]  }
0x1078   :  { %v2273_v24 = vpop.eup %2272 }
0x1079   :  { %v1338_v25 = vadd.f32 1.0, %v2273_v24  ;;  %v2275_v29 = vpop.eup %2274  ;;  %v3265_v24 = vld [vmem:[%s3527_s4 + $0x24] ss:$8 sps:$4 sm:$0xff]  }
0x107b   :  { %2276 = vrcp.f32 %v1338_v25  ;;  %v3273_v25 = vld [vmem:[%s3527_s4 + $0x20] ss:$8 sps:$4 sm:$0xff]  }
0x107c   :  { %2278 = vpow2.f32 %v2081_v35 }
0x1085   :  { %v2277_v4 = vpop.eup %2276 }
0x1086   :  { %v1349_v9 = vmul.f32 %v2277_v4, %v2275_v29  ;;  %v2279_v10 = vpop.eup %2278  ;;  %v1348_v46 = vmul.f32 %v2277_v4, %v2998_v12  ;;  %v3243_v12 = vld [vmem:[%s3527_s4] ss:$8 sps:$4 sm:$0xff]   ;;  %v3279_v29 = vld [vmem:[%s3527_s4 + $0x34] ss:$8 sps:$4 sm:$0xff]   ;;  %v3287_v4 = vld [vmem:[%s3527_s4 + $0x30] ss:$8 sps:$4 sm:$0xff]  }
0x1087   :  { %v1345_v11 = vadd.f32 1.0, %v2279_v10 }
0x1088   :  { %1351 = vrot.lane.b32.xlu1 %v1349_v9, %s2398_s1 }
0x1089   :  { %2280 = vrcp.f32 %v1345_v11 }
0x108c   :  { %109 = vperm.xlu1 %2103, %v78_v17  }
0x1093   :  { %v2281_v56 = vpop.eup %2280 }
0x10fa   :  { %v1352_v13 = vpop.permute.xlu1 %1351 }
0x10fb   :  { %v3233_v53 = vadd.f32 %v1352_v13, %v1348_v46 }
0x10fd   :  { %2282 = vtanh.f32 %v3233_v53 }
0x1107   :  { %v2283_v58 = vpop.eup %2282 }
0x1108   :  { %v3236_v60 = vmul.f32 %v2283_v58, %v2281_v56 }
0x110a   :  { %3570 = vst [vmem:[#allocation13_spill] sm:$0xff] %v3236_v60  ;;  %v1367_v8 = vsel %vm506_vm0, %v1365_v62, %v3236_v60 }
0x110b   :  { %v1368_v19 = vpack.c.bf16 %v1367_v8, %v1367_v8  ;;  %v110_v9 = vpop.permute.xlu1 %109 }
0x110c   :  { %v143_v17 = vmul.f32 %v3565_v5, %v110_v9  ;;  %v144_v60 = vmul.f32 %v2568_v31, %v110_v9 }
0x110d   :  { %1402 = vmatmul.mubr.bf16.vlgmr.msra.gmra.mrb[28].mxu1 %v1368_v19  ;;  %1443 = vmatmul.mubr.bf16.vlgmr.msra.gmra.mrb[32].mxu0 %v1368_v19 }
0x110e   :  { %1486 = vmatpush1.bf16.msra.mxu1 %v3243_v12  ;;  %1517 = vmatprep.mubr.bf16.mxu1 %v3556_v1  ;;  %v171_v35 = vadd.f32 %v3566_v7, %v143_v17  ;;  %v172_v40 = vadd.f32 %v2572_v38, %v144_v60 }
0x110f   :  { %1487 = vmatprep.subr.bf16.mxu1 %v3250_v20  ;;  %1563 = vmatpush1.bf16.msra.mxu0 %v3011_v34 }
0x1110   :  { %1564 = vmatprep.subr.bf16.mxu0 %v3017_v23  ;;  %1594 = vmatprep.mubr.bf16.mxu0 %v3556_v1 }
0x1112   :  { %1488 = vmatpush1.bf16.msra.mxu1 %v3259_v22 }
0x1113   :  { %1489 = vmatprep.subr.bf16.mxu1 %v3265_v24  ;;  %1565 = vmatpush1.bf16.msra.mxu0 %v3026_v52 }
0x1114   :  { %1566 = vmatprep.subr.bf16.mxu0 %v3032_v54 }
0x1116   :  { %1490 = vmatpush1.bf16.msra.mxu1 %v3273_v25 }
0x1117   :  { %1491 = vmatprep.subr.bf16.mxu1 %v3279_v29  ;;  %1567 = vmatpush1.bf16.msra.mxu0 %v3040_v55 }
0x1118   :  { %1568 = vmatprep.subr.bf16.mxu0 %v3046_v57 }
0x111a   :  { %1492 = vmatpush1.bf16.msra.mxu1 %v3287_v4 }
0x111b   :  { %1603 = vmatprep.subr.bf16.mxu1 %v3053_v59  ;;  %1569 = vmatpush1.bf16.msra.mxu0 %v3059_v61 }
0x111c   :  { %1570 = vmatprep.subr.bf16.mxu0 %v3065_v16 }
0x111f   :  { %1571 = vmatpush1.bf16.msra.mxu0 %v3071_v63 }
0x1120   :  { %1572 = vmatprep.subr.bf16.mxu0 %v3077_v27 }
0x1123   :  { %1573 = vmatpush1.bf16.msra.mxu0 %v3083_v36 }
0x1124   :  { %1574 = vmatprep.subr.bf16.mxu0 %v3089_v42 }
0x1127   :  { %1575 = vmatpush1.bf16.msra.mxu0 %v3095_v43 }
0x1128   :  { %1576 = vmatprep.subr.bf16.mxu0 %v3101_v30 }
0x112b   :  { %1577 = vmatpush1.bf16.msra.mxu0 %v3107_v0 }
0x112c   :  { %1678 = vmatprep.subr.bf16.mxu0 %v3113_v26 }
0x11e0   :  { %v1403_v10 = vpop.f32.mrb[28].mxu1  ;;  %v1444_v11 = vpop.f32.mrb[32].mxu0 }
0x11e1   :  { %v1454_v46 = vadd.f32 %v1403_v10, %v171_v35  ;;  %v1405_v13 = vpop.f32.mrb[29].mxu1  ;;  %v1446_v56 = vpop.f32.mrb[33].mxu0 }
0x11e2   :  { %v1407_v58 = vpop.f32.mrb[30].mxu1  ;;  %v1448_v62 = vpop.f32.mrb[34].mxu0  ;;  %v1455_v26 = vadd.f32 %v1405_v13, %v172_v40 }
0x11e3   :  { %v2082_v8 = vmul.f32 -1.442695, %v1454_v46  ;;  %v1408_v19 = vpop.f32.mrb[31].mxu1  ;;  %v1449_v33 = vpop.f32.mrb[35].mxu0 }
0x11e4   :  { %v2083_v10 = vmul.f32 -1.442695, %v1455_v26 }
0x11e5   :  { %2284 = vpow2.f32 %v2082_v8 }
0x11e6   :  { %2286 = vtanh.f32 %v1455_v26 }
0x11ef   :  { %v2285_v0 = vpop.eup %2284 }
0x11f0   :  { %v1459_v5 = vadd.f32 1.0, %v2285_v0  ;;  %v2287_v17 = vpop.eup %2286 }
0x11f2   :  { %2288 = vrcp.f32 %v1459_v5 }
0x11f3   :  { %2290 = vpow2.f32 %v2083_v10 }
0x11fc   :  { %v2289_v7 = vpop.eup %2288 }
0x11fd   :  { %v1470_v35 = vmul.f32 %v2289_v7, %v2287_v17  ;;  %v2291_v46 = vpop.eup %2290  ;;  %v1469_v33 = vmul.f32 %v2289_v7, %v3126_v6 }
0x11fe   :  { %v1466_v58 = vadd.f32 1.0, %v2291_v46 }
0x11ff   :  { %1472 = vrot.lane.b32.xlu0 %v1470_v35, %s2398_s1 }
0x1200   :  { %2292 = vrcp.f32 %v1466_v58 }
0x120a   :  { %v2293_v40 = vpop.eup %2292 }
0x1271   :  { %v1473_v62 = vpop.permute.xlu0 %1472 }
0x1272   :  { %v3307_v9 = vadd.f32 %v1473_v62, %v1469_v33 }
0x1274   :  { %2294 = vtanh.f32 %v3307_v9 }
0x127e   :  { %v2295_v0 = vpop.eup %2294 }
0x127f   :  { %v1477_v5 = vmul.f32 %v2295_v0, %v2293_v40 }
0x1281   :  { %v1478_v60 = vpack.c.bf16 %v1477_v5, %v1477_v5 }
0x1283   :  { %1480 = vrot.lane.b32.xlu1 %v1478_v60, %s2398_s1 }
0x1287   :  { %1557 = vrot.lane.b32.xlu1 %v1477_v5, %s2398_s1 }
0x12f5   :  { %v1481_v26 = vpop.permute.xlu1 %1480 }
0x12f6   :  { %2084 = vmatmul.mubr.msk.bf16.vlgmr.msra.gmra.mrb[32].mxu1 %vm506_vm0, %v1481_v26 }
0x12f7   :  { %1604 = vmatpush1.bf16.msra.mxu1 %v3135_v21  ;;  %1635 = vmatprep.mubr.bf16.mxu1 %v3556_v1 }
0x12f8   :  { %1605 = vmatprep.subr.bf16.mxu1 %v3142_v14 }
0x12fb   :  { %1606 = vmatpush1.bf16.msra.mxu1 %v3148_v18 }
0x12fc   :  { %1607 = vmatprep.subr.bf16.mxu1 %v3154_v15 }
0x12ff   :  { %1608 = vmatpush1.bf16.msra.mxu1 %v3160_v51 }
0x1300   :  { %1609 = vmatprep.subr.bf16.mxu1 %v3166_v32 }
0x1303   :  { %1610 = vmatpush1.bf16.msra.mxu1 %v3172_v44 }
0x1304   :  { %1611 = vmatprep.subr.bf16.mxu1 %v3178_v28 }
0x1307   :  { %1612 = vmatpush1.bf16.msra.mxu1 %v3184_v41 }
0x1308   :  { %1613 = vmatprep.subr.bf16.mxu1 %v3190_v39 }
0x130b   :  { %1614 = vmatpush1.bf16.msra.mxu1 %v3196_v2 }
0x130c   :  { %1615 = vmatprep.subr.bf16.mxu1 %v3202_v3 }
0x130f   :  { %1616 = vmatpush1.bf16.msra.mxu1 %v3208_v48 }
0x1310   :  { %1617 = vmatprep.subr.bf16.mxu1 %v3214_v49 }
0x1313   :  { %1618 = vmatpush1.bf16.msra.mxu1 %v3220_v50 }
0x1314   :  { %1755 = vmatprep.subr.bf16.mxu1 %v2988_v47  ;;  %v79_v47 = vld [vmem:[%s3524_s0 + $0x30] sm:$0xff] }
0x13c9   :  { %v1519_v7 = vpop.f32.mrb[32].mxu1 }
0x13ca   :  { %v1520_v6 = vadd.f32 %v1519_v7, %v1444_v11  ;;  %v1521_v13 = vpop.f32.mrb[33].mxu1 }
0x13cb   :  { %v1522_v8 = vadd.f32 %v1521_v13, %v1446_v56  ;;  %v1523_v19 = vpop.f32.mrb[34].mxu1 }
0x13cc   :  { %v1526_v17 = vadd.f32 %v1520_v6, %v2775_v45  ;;  %v1524_v35 = vpop.f32.mrb[35].mxu1  ;;  %v1558_v19 = vpop.permute.xlu1 %1557 }
0x13cd   :  { %v1527_v46 = vadd.f32 %v1522_v8, %v2779_v37 }
0x13ce   :  { %v2085_v10 = vmul.f32 -1.442695, %v1526_v17 }
0x13cf   :  { %v2086_v11 = vmul.f32 -1.442695, %v1527_v46 }
0x13d0   :  { %2296 = vpow2.f32 %v2085_v10 }
0x13d1   :  { %2298 = vtanh.f32 %v1527_v46 }
0x13da   :  { %v2297_v58 = vpop.eup %2296 }
0x13db   :  { %v1531_v33 = vadd.f32 1.0, %v2297_v58  ;;  %v2299_v62 = vpop.eup %2298 }
0x13dd   :  { %2300 = vrcp.f32 %v1531_v33 }
0x13de   :  { %2302 = vpow2.f32 %v2086_v11 }
0x13e7   :  { %v2301_v40 = vpop.eup %2300 }
0x13e8   :  { %v1542_v0 = vmul.f32 %v2301_v40, %v2299_v62  ;;  %v2303_v56 = vpop.eup %2302  ;;  %v1541_v60 = vmul.f32 %v2301_v40, %v3233_v53 }
0x13e9   :  { %v1538_v5 = vadd.f32 1.0, %v2303_v56 }
0x13ea   :  { %1544 = vrot.lane.b32.xlu0 %v1542_v0, %s2398_s1 }
0x13eb   :  { %2304 = vrcp.f32 %v1538_v5 }
0x13ee   :  { %114 = vperm.xlu0 %2102, %v79_v47  }
0x13f5   :  { %v2305_v6 = vpop.eup %2304 }
0x145c   :  { %v1545_v26 = vpop.permute.xlu0 %1544 }
0x145d   :  { %v3337_v7 = vadd.f32 %v1545_v26, %v1541_v60 }
0x145f   :  { %2306 = vtanh.f32 %v3337_v7 }
0x1469   :  { %v2307_v13 = vpop.eup %2306 }
0x146a   :  { %v3340_v8 = vmul.f32 %v2307_v13, %v2305_v6 }
0x146c   :  { %v1560_v17 = vsel %vm506_vm0, %v1558_v19, %v3340_v8 }
0x146d   :  { %v1561_v35 = vpack.c.bf16 %v1560_v17, %v1560_v17 }
0x146f   :  { %1595 = vmatmul.mubr.bf16.vlgmr.msra.gmra.mrb[36].mxu0 %v1561_v35  ;;  %1636 = vmatmul.mubr.bf16.vlgmr.msra.gmra.mrb[36].mxu1 %v1561_v35 }
0x1470   :  { %1679 = vmatpush1.bf16.msra.mxu0 %v3243_v12  ;;  %1710 = vmatprep.mubr.bf16.mxu0 %v3556_v1 }
0x1471   :  { %1680 = vmatprep.subr.bf16.mxu0 %v3250_v20  ;;  %1756 = vmatpush1.bf16.msra.mxu1 %v3011_v34  ;;  %v3571_v34 = vld [vmem:[#allocation8_spill] sm:$0xff] }
0x1472   :  { %1757 = vmatprep.subr.bf16.mxu1 %v3017_v23  ;;  %1787 = vmatprep.mubr.bf16.mxu1 %v3556_v1  ;;  %v3572_v23 = vld [vmem:[#allocation12_spill] sm:$0xff] }
0x1474   :  { %1681 = vmatpush1.bf16.msra.mxu0 %v3259_v22 }
0x1475   :  { %1682 = vmatprep.subr.bf16.mxu0 %v3265_v24  ;;  %1758 = vmatpush1.bf16.msra.mxu1 %v3026_v52  ;;  %v115_v52 = vpop.permute.xlu0 %114 }
0x1476   :  { %1759 = vmatprep.subr.bf16.mxu1 %v3032_v54  ;;  %v3573_v54 = vld [vmem:[#allocation6_spill] sm:$0xff] }
0x1478   :  { %1683 = vmatpush1.bf16.msra.mxu0 %v3273_v25 }
0x1479   :  { %1684 = vmatprep.subr.bf16.mxu0 %v3279_v29  ;;  %1760 = vmatpush1.bf16.msra.mxu1 %v3040_v55  ;;  %v145_v55 = vmul.f32 %v3573_v54, %v115_v52 }
0x147a   :  { %1761 = vmatprep.subr.bf16.mxu1 %v3046_v57  ;;  %v3574_v57 = vld [vmem:[#allocation7_spill] sm:$0xff] }
0x147c   :  { %1685 = vmatpush1.bf16.msra.mxu0 %v3287_v4 }
0x147d   :  { %1796 = vmatprep.subr.bf16.mxu0 %v3053_v59  ;;  %1762 = vmatpush1.bf16.msra.mxu1 %v3059_v61  ;;  %v173_v59 = vadd.f32 %v3574_v57, %v145_v55 }
0x147e   :  { %1763 = vmatprep.subr.bf16.mxu1 %v3065_v16 }
0x1481   :  { %1764 = vmatpush1.bf16.msra.mxu1 %v3071_v63 }
0x1482   :  { %1765 = vmatprep.subr.bf16.mxu1 %v3077_v27 }
0x1485   :  { %1766 = vmatpush1.bf16.msra.mxu1 %v3083_v36 }
0x1486   :  { %1767 = vmatprep.subr.bf16.mxu1 %v3089_v42 }
0x1489   :  { %1768 = vmatpush1.bf16.msra.mxu1 %v3095_v43 }
0x148a   :  { %1769 = vmatprep.subr.bf16.mxu1 %v3101_v30  ;;  %v146_v30 = vmul.f32 %v2568_v31, %v115_v52 }
0x148c   :  { %v174_v58 = vadd.f32 %v2572_v38, %v146_v30 }
0x148d   :  { %1770 = vmatpush1.bf16.msra.mxu1 %v3571_v34 }
0x148e   :  { %1871 = vmatprep.subr.bf16.mxu1 %v3572_v23 }
0x1542   :  { %v1596_v61 = vpop.f32.mrb[36].mxu0  ;;  %v1637_v16 = vpop.f32.mrb[36].mxu1 }
0x1543   :  { %v1647_v63 = vadd.f32 %v1596_v61, %v173_v59  ;;  %v1598_v27 = vpop.f32.mrb[37].mxu0  ;;  %v1639_v36 = vpop.f32.mrb[37].mxu1 }
0x1544   :  { %v1600_v53 = vpop.f32.mrb[38].mxu0  ;;  %v1641_v42 = vpop.f32.mrb[38].mxu1  ;;  %v1648_v33 = vadd.f32 %v1598_v27, %v174_v58 }
0x1545   :  { %v2087_v10 = vmul.f32 -1.442695, %v1647_v63  ;;  %v1601_v43 = vpop.f32.mrb[39].mxu0  ;;  %v1642_v46 = vpop.f32.mrb[39].mxu1 }
0x1546   :  { %v2088_v56 = vmul.f32 -1.442695, %v1648_v33 }
0x1547   :  { %2308 = vpow2.f32 %v2087_v10 }
0x1548   :  { %2310 = vtanh.f32 %v1648_v33 }
0x1551   :  { %v2309_v62 = vpop.eup %2308 }
0x1552   :  { %v1652_v40 = vadd.f32 1.0, %v2309_v62  ;;  %v2311_v0 = vpop.eup %2310 }
0x1554   :  { %2312 = vrcp.f32 %v1652_v40 }
0x1555   :  { %2314 = vpow2.f32 %v2088_v56 }
0x155e   :  { %v2313_v47 = vpop.eup %2312 }
0x155f   :  { %v1663_v11 = vmul.f32 %v2313_v47, %v2311_v0  ;;  %v2315_v5 = vpop.eup %2314  ;;  %v1662_v26 = vmul.f32 %v2313_v47, %v3307_v9 }
0x1560   :  { %v1659_v60 = vadd.f32 1.0, %v2315_v5 }
0x1561   :  { %1665 = vrot.lane.b32.xlu1 %v1663_v11, %s2398_s1 }
0x1562   :  { %2316 = vrcp.f32 %v1659_v60 }
0x156c   :  { %v2317_v19 = vpop.eup %2316 }
0x15d3   :  { %v1666_v6 = vpop.permute.xlu1 %1665 }
0x15d4   :  { %v3376_v13 = vadd.f32 %v1666_v6, %v1662_v26 }
0x15d6   :  { %2318 = vtanh.f32 %v3376_v13 }
0x15e0   :  { %v2319_v17 = vpop.eup %2318 }
0x15e1   :  { %v1670_v35 = vmul.f32 %v2319_v17, %v2317_v19 }
0x15e3   :  { %v1671_v34 = vpack.c.bf16 %v1670_v35, %v1670_v35 }
0x15e5   :  { %1673 = vrot.lane.b32.xlu0 %v1671_v34, %s2398_s1  ;;  %v3575_v34 = vld [vmem:[#allocation9_spill] sm:$0xff] }
0x15e9   :  { %1750 = vrot.lane.b32.xlu0 %v1670_v35, %s2398_s1 }
0x1657   :  { %v1674_v23 = vpop.permute.xlu0 %1673 }
0x1658   :  { %2089 = vmatmul.mubr.msk.bf16.vlgmr.msra.gmra.mrb[40].mxu0 %vm506_vm0, %v1674_v23  ;;  %v13_v23 = vstv %s3529_s7 }
0x1659   :  { %1797 = vmatpush1.bf16.msra.mxu0 %v3135_v21  ;;  %1828 = vmatprep.mubr.bf16.mxu0 %v3556_v1  ;;  %14 = vst [vmem:[#allocation4] sm:$0x1] %v13_v23 }
0x165a   :  { %1798 = vmatprep.subr.bf16.mxu0 %v3142_v14 }
0x165b   :  { %v1751_v53 = vpop.permute.xlu0 %1750 }
0x165d   :  { %1799 = vmatpush1.bf16.msra.mxu0 %v3148_v18 }
0x165e   :  { %1800 = vmatprep.subr.bf16.mxu0 %v3154_v15 }
0x1661   :  { %1801 = vmatpush1.bf16.msra.mxu0 %v3160_v51 }
0x1662   :  { %1802 = vmatprep.subr.bf16.mxu0 %v3166_v32 }
0x1665   :  { %1803 = vmatpush1.bf16.msra.mxu0 %v3172_v44 }
0x1666   :  { %1804 = vmatprep.subr.bf16.mxu0 %v3178_v28 }
0x1669   :  { %1805 = vmatpush1.bf16.msra.mxu0 %v3184_v41 }
0x166a   :  { %1806 = vmatprep.subr.bf16.mxu0 %v3190_v39 }
0x166d   :  { %1807 = vmatpush1.bf16.msra.mxu0 %v3196_v2 }
0x166e   :  { %1808 = vmatprep.subr.bf16.mxu0 %v3202_v3 }
0x1671   :  { %1809 = vmatpush1.bf16.msra.mxu0 %v3208_v48 }
0x1672   :  { %1810 = vmatprep.subr.bf16.mxu0 %v3214_v49 }
0x1675   :  { %1811 = vmatpush1.bf16.msra.mxu0 %v3220_v50  ;;  %v80_v50 = vld [vmem:[%s3524_s0 + $0x38] sm:$0xff] }
0x172b   :  { %v1712_v21 = vpop.f32.mrb[40].mxu0 }
0x172c   :  { %v1713_v14 = vadd.f32 %v1712_v21, %v1637_v16  ;;  %v1714_v18 = vpop.f32.mrb[41].mxu0  ;;  %v3577_v21 = vld [vmem:[#allocation13_spill] sm:$0xff] }
0x172d   :  { %v1715_v15 = vadd.f32 %v1714_v18, %v1639_v36  ;;  %v1716_v51 = vpop.f32.mrb[42].mxu0 }
0x172e   :  { %v1719_v32 = vadd.f32 %v1713_v14, %v2775_v45  ;;  %v1717_v44 = vpop.f32.mrb[43].mxu0  ;;  %v3444_v51 = vld [vmem:[%s3530_s6] ss:$0 sm:$0xff] }
0x172f   :  { %v1720_v41 = vadd.f32 %v1715_v15, %v2779_v37 }
0x1730   :  { %v2090_v28 = vmul.f32 -1.442695, %v1719_v32 }
0x1731   :  { %v2091_v9 = vmul.f32 -1.442695, %v1720_v41 }
0x1732   :  { %2320 = vpow2.f32 %v2090_v28 }
0x1733   :  { %2322 = vtanh.f32 %v1720_v41 }
0x173c   :  { %v2321_v39 = vpop.eup %2320 }
0x173d   :  { %v1724_v2 = vadd.f32 1.0, %v2321_v39  ;;  %v2323_v3 = vpop.eup %2322 }
0x173f   :  { %2324 = vrcp.f32 %v1724_v2  ;;  %v3450_v2 = vld [vmem:[#allocation4] ss:$0 sm:$0xff] }
0x1740   :  { %2326 = vpow2.f32 %v2091_v9 }
0x1749   :  { %v2325_v48 = vpop.eup %2324 }
0x174a   :  { %v1735_v49 = vmul.f32 %v2325_v48, %v2323_v3  ;;  %v2327_v52 = vpop.eup %2326  ;;  %v1734_v59 = vmul.f32 %v2325_v48, %v3337_v7 }
0x174b   :  { %v1731_v55 = vadd.f32 1.0, %v2327_v52 }
0x174c   :  { %1737 = vrot.lane.b32.xlu1 %v1735_v49, %s2398_s1 }
0x174d   :  { %2328 = vrcp.f32 %v1731_v55 }
0x1750   :  { %119 = vperm.xlu1 %2103, %v80_v50  }
0x1757   :  { %v2329_v63 = vpop.eup %2328 }
0x17be   :  { %v1738_v61 = vpop.permute.xlu1 %1737 }
0x17bf   :  { %v3405_v16 = vadd.f32 %v1738_v61, %v1734_v59 }
0x17c1   :  { %2330 = vtanh.f32 %v3405_v16 }
0x17cb   :  { %v2331_v27 = vpop.eup %2330 }
0x17cc   :  { %v1742_v36 = vmul.f32 %v2331_v27, %v2329_v63 }
0x17ce   :  { %v1753_v42 = vsel %vm506_vm0, %v1751_v53, %v1742_v36 }
0x17cf   :  { %v1754_v10 = vpack.c.bf16 %v1753_v42, %v1753_v42  ;;  %v120_v7 = vpop.permute.xlu1 %119 }
0x17d0   :  { %v147_v43 = vmul.f32 %v3573_v54, %v120_v7 }
0x17d1   :  { %1788 = vmatmul.mubr.bf16.vlgmr.msra.gmra.mrb[40].mxu1 %v1754_v10  ;;  %1829 = vmatmul.mubr.bf16.vlgmr.msra.gmra.mrb[44].mxu0 %v1754_v10 }
0x17d2   :  { %1872 = vmatpush1.bf16.msra.mxu1 %v3243_v12  ;;  %1903 = vmatprep.mubr.bf16.mxu1 %v3556_v1  ;;  %v175_v46 = vadd.f32 %v3574_v57, %v147_v43  ;;  %v3578_v43 = vld [vmem:[#allocation10_spill] sm:$0xff] }
0x17d3   :  { %1873 = vmatprep.subr.bf16.mxu1 %v3250_v20 }
0x17d6   :  { %1874 = vmatpush1.bf16.msra.mxu1 %v3259_v22 }
0x17d7   :  { %1875 = vmatprep.subr.bf16.mxu1 %v3265_v24 }
0x17da   :  { %1876 = vmatpush1.bf16.msra.mxu1 %v3273_v25 }
0x17db   :  { %1877 = vmatprep.subr.bf16.mxu1 %v3279_v29  ;;  %v148_v29 = vmul.f32 %v2568_v31, %v120_v7 }
0x17de   :  { %1878 = vmatpush1.bf16.msra.mxu1 %v3287_v4  ;;  %v176_v4 = vadd.f32 %v2572_v38, %v148_v29 }
0x18a4   :  { %v1789_v12 = vpop.f32.mrb[40].mxu1  ;;  %v3419_v30 = vpop.f32.mrb[44].mxu0 }
0x18a5   :  { %v1840_v1 = vadd.f32 %v1789_v12, %v175_v46  ;;  %v1791_v20 = vpop.f32.mrb[41].mxu1  ;;  %v3421_v58 = vpop.f32.mrb[45].mxu0  ;;  %v3579_v46 = vld [vmem:[#allocation5_spill] sm:$0xff] }
0x18a6   :  { %v1793_v22 = vpop.f32.mrb[42].mxu1  ;;  %v1834_v24 = vpop.f32.mrb[46].mxu0  ;;  %v1841_v54 = vadd.f32 %v1791_v20, %v176_v4 }
0x18a7   :  { %v2092_v33 = vmul.f32 -1.442695, %v1840_v1  ;;  %v1794_v25 = vpop.f32.mrb[43].mxu1  ;;  %v1835_v62 = vpop.f32.mrb[47].mxu0 }
0x18a8   :  { %v2093_v56 = vmul.f32 -1.442695, %v1841_v54 }
0x18a9   :  { %2332 = vpow2.f32 %v2092_v33 }
0x18aa   :  { %2334 = vtanh.f32 %v1841_v54 }
0x18b3   :  { %v2333_v40 = vpop.eup %2332 }
0x18b4   :  { %v1845_v57 = vadd.f32 1.0, %v2333_v40  ;;  %v2335_v0 = vpop.eup %2334 }
0x18b6   :  { %2336 = vrcp.f32 %v1845_v57 }
0x18b7   :  { %2338 = vpow2.f32 %v2093_v56 }
0x18c0   :  { %v2337_v47 = vpop.eup %2336 }
0x18c1   :  { %v1856_v11 = vmul.f32 %v2337_v47, %v2335_v0  ;;  %v2339_v5 = vpop.eup %2338  ;;  %v1855_v26 = vmul.f32 %v2337_v47, %v3376_v13  ;;  %v3576_v13 = vld [vmem:[#allocation11_spill] sm:$0xff] }
0x18c2   :  { %v1852_v60 = vadd.f32 1.0, %v2339_v5 }
0x18c3   :  { %1858 = vrot.lane.b32.xlu0 %v1856_v11, %s2398_s1 }
0x18c4   :  { %2340 = vrcp.f32 %v1852_v60 }
0x18ce   :  { %v2341_v38 = vpop.eup %2340 }
0x1935   :  { %v1859_v6 = vpop.permute.xlu0 %1858 }
0x1936   :  { %v1861_v31 = vadd.f32 %v1859_v6, %v1855_v26 }
0x1938   :  { %2342 = vtanh.f32 %v1861_v31 }
0x1942   :  { %v2343_v19 = vpop.eup %2342 }
0x1943   :  { %v1863_v17 = vmul.f32 %v2343_v19, %v2341_v38 }
0x1945   :  { %v1864_v35 = vpack.c.bf16 %v1863_v17, %v1863_v17 }
0x1947   :  { %1866 = vrot.lane.b32.xlu1 %v1864_v35, %s2398_s1 }
0x194b   :  { %587 = vrot.lane.b32.xlu1 %v3575_v34, %s2398_s1 }
0x194f   :  { %972 = vrot.lane.b32.xlu1 %v3576_v13, %s2398_s1 }
0x1953   :  { %1358 = vrot.lane.b32.xlu1 %v3577_v21, %s2398_s1 }
0x1957   :  { %1744 = vrot.lane.b32.xlu1 %v1742_v36, %s2398_s1 }
0x19b9   :  { %v1867_v14 = vpop.permute.xlu1 %1866 }
0x19ba   :  { %2094 = vmatmul.mubr.msk.bf16.vlgmr.msra.gmra.mrb[44].mxu1 %vm506_vm0, %v1867_v14 }
0x19bd   :  { %v588_v18 = vpop.permute.xlu1 %587 }
0x19be   :  { %590 = vst.msk [vmem:[#allocation3] sm:$0xff] %vm506_vm0, %v588_v18 }
0x19c1   :  { %v973_v15 = vpop.permute.xlu1 %972 }
0x19c2   :  { %976 = vst.msk [vmem:[#allocation3 + $0x10] sm:$0xff] %vm506_vm0, %v973_v15 }
0x19c5   :  { %v1359_v32 = vpop.permute.xlu1 %1358  ;;  %v1942_v44 = vld [vmem:[#allocation3] sm:$0xff] }
0x19c6   :  { %1362 = vst.msk [vmem:[#allocation3 + $0x20] sm:$0xff] %vm506_vm0, %v1359_v32  ;;  %v1957_v28 = vmul.f32 %v3444_v51, %v1942_v44 }
0x19c8   :  { %v1965_v41 = vsel %vm506_vm0, %v1957_v28, 0.0 }
0x19c9   :  { %1966 = vadd.xlane.f32.xlu1 %v1965_v41  ;;  %v1745_v39 = vpop.permute.xlu1 %1744  ;;  %v1944_v47 = vld [vmem:[#allocation3 + $0x10] sm:$0xff] }
0x19ca   :  { %1748 = vst.msk [vmem:[#allocation3 + $0x30] sm:$0xff] %vm506_vm0, %v1745_v39  ;;  %v1959_v56 = vmul.f32 %v3444_v51, %v1944_v47 }
0x19cc   :  { %v1971_v60 = vsel %vm506_vm0, %v1959_v56, 0.0 }
0x19cd   :  { %v1946_v5 = vld [vmem:[#allocation3 + $0x20] sm:$0xff] }
0x19ce   :  { %v1961_v26 = vmul.f32 %v3444_v51, %v1946_v5 }
0x19d0   :  { %v1977_v31 = vsel %vm506_vm0, %v1961_v26, 0.0 }
0x19d1   :  { %v1948_v6 = vld [vmem:[#allocation3 + $0x30] sm:$0xff] }
0x19d2   :  { %v1963_v38 = vmul.f32 %v3444_v51, %v1948_v6 }
0x19d4   :  { %v1983_v19 = vsel %vm506_vm0, %v1963_v38, 0.0 }
0x1a56   :  { %v1967_v3 = vpop.xlane.xlu1 %1966 }
0x1a57   :  { %v1996_v48 = vadd.f32 %v3450_v2, %v1967_v3 }
0x1a59   :  { %2005 = vst.msk [vmem:[%s3531_s8] sm:$0xff] %vm2004_vm1, %v1996_v48 }
0x1a8d   :  { %v1905_v49 = vpop.f32.mrb[44].mxu1 }
0x1a8e   :  { %v1906_v50 = vadd.f32 %v1905_v49, %v3419_v30  ;;  %v1907_v9 = vpop.f32.mrb[45].mxu1 }
0x1a8f   :  { %v1908_v52 = vadd.f32 %v1907_v9, %v3421_v58  ;;  %v1909_v55 = vpop.f32.mrb[46].mxu1 }
0x1a90   :  { %v1912_v59 = vadd.f32 %v1906_v50, %v2775_v45  ;;  %v1910_v61 = vpop.f32.mrb[47].mxu1 }
0x1a91   :  { %v1913_v27 = vadd.f32 %v1908_v52, %v2779_v37 }
0x1a92   :  { %v2095_v63 = vmul.f32 -1.442695, %v1912_v59 }
0x1a93   :  { %v2096_v45 = vmul.f32 -1.442695, %v1913_v27 }
0x1a94   :  { %2344 = vpow2.f32 %v2095_v63 }
0x1a95   :  { %2346 = vtanh.f32 %v1913_v27 }
0x1a9e   :  { %v2345_v36 = vpop.eup %2344 }
0x1a9f   :  { %v1917_v53 = vadd.f32 1.0, %v2345_v36  ;;  %v2347_v42 = vpop.eup %2346 }
0x1aa1   :  { %2348 = vrcp.f32 %v1917_v53 }
0x1aa2   :  { %2350 = vpow2.f32 %v2096_v45 }
0x1aab   :  { %v2349_v10 = vpop.eup %2348 }
0x1aac   :  { %v1928_v7 = vmul.f32 %v2349_v10, %v2347_v42  ;;  %v2351_v37 = vpop.eup %2350  ;;  %v1927_v30 = vmul.f32 %v2349_v10, %v3405_v16 }
0x1aad   :  { %v1924_v12 = vadd.f32 1.0, %v2351_v37 }
0x1aae   :  { %1930 = vrot.lane.b32.xlu0 %v1928_v7, %s2398_s1 }
0x1aaf   :  { %2352 = vrcp.f32 %v1924_v12 }
0x1ab2   :  { %779 = vrot.lane.b32.xlu0 %v3578_v43, %s2398_s1 }
0x1ab6   :  { %1165 = vrot.lane.b32.xlu0 %v3579_v46, %s2398_s1 }
0x1ab9   :  { %v2353_v24 = vpop.eup %2352 }
0x1aba   :  { %1551 = vrot.lane.b32.xlu0 %v3340_v8, %s2398_s1 }
0x1b20   :  { %v1931_v1 = vpop.permute.xlu0 %1930 }
0x1b21   :  { %v1933_v20 = vadd.f32 %v1931_v1, %v1927_v30 }
0x1b23   :  { %2354 = vtanh.f32 %v1933_v20 }
0x1b24   :  { %v780_v58 = vpop.permute.xlu0 %779 }
0x1b25   :  { %783 = vst.msk [vmem:[#allocation3 + $0x8] sm:$0xff] %vm506_vm0, %v780_v58 }
0x1b28   :  { %v1166_v22 = vpop.permute.xlu0 %1165 }
0x1b29   :  { %1169 = vst.msk [vmem:[#allocation3 + $0x18] sm:$0xff] %vm506_vm0, %v1166_v22 }
0x1b2c   :  { %v1552_v33 = vpop.permute.xlu0 %1551  ;;  %v1943_v57 = vld [vmem:[#allocation3 + $0x8] sm:$0xff] }
0x1b2d   :  { %v2355_v25 = vpop.eup %2354  ;;  %1555 = vst.msk [vmem:[#allocation3 + $0x28] sm:$0xff] %vm506_vm0, %v1552_v33  ;;  %v1958_v0 = vmul.f32 %v3444_v51, %v1943_v57 }
0x1b2e   :  { %v1935_v8 = vmul.f32 %v2355_v25, %v2353_v24 }
0x1b2f   :  { %v1968_v11 = vsel %vm506_vm0, %v1958_v0, 0.0 }
0x1b30   :  { %1937 = vrot.lane.b32.xlu0 %v1935_v8, %s2398_s1  ;;  %v1945_v62 = vld [vmem:[#allocation3 + $0x18] sm:$0xff] }
0x1b31   :  { %v1960_v16 = vmul.f32 %v3444_v51, %v1945_v62 }
0x1b33   :  { %v1974_v29 = vsel %vm506_vm0, %v1960_v16, 0.0 }
0x1b34   :  { %1975 = vadd.xlane.f32.xlu1 %v1974_v29  ;;  %v1947_v4 = vld [vmem:[#allocation3 + $0x28] sm:$0xff] }
0x1b35   :  { %v1962_v54 = vmul.f32 %v3444_v51, %v1947_v4 }
0x1b37   :  { %v1980_v40 = vsel %vm506_vm0, %v1962_v54, 0.0 }
0x1b38   :  { %1981 = vadd.xlane.f32.xlu1 %v1980_v40 }
0x1b4f   :  { %1969 = vadd.xlane.f32.xlu0 %v1968_v11 }
0x1b53   :  { %1972 = vadd.xlane.f32.xlu0 %v1971_v60 }
0x1b57   :  { %1978 = vadd.xlane.f32.xlu0 %v1977_v31 }
0x1b5b   :  { %1984 = vadd.xlane.f32.xlu0 %v1983_v19 }
0x1ba2   :  { %v1938_v17 = vpop.permute.xlu0 %1937 }
0x1ba3   :  { %1941 = vst.msk [vmem:[#allocation3 + $0x38] sm:$0xff] %vm506_vm0, %v1938_v17 }
0x1baa   :  { %v1949_v35 = vld [vmem:[#allocation3 + $0x38] sm:$0xff] }
0x1bab   :  { %v1964_v34 = vmul.f32 %v3444_v51, %v1949_v35 }
0x1bad   :  { %v1986_v23 = vsel %vm506_vm0, %v1964_v34, 0.0 }
0x1bae   :  { %1987 = vadd.xlane.f32.xlu1 %v1986_v23 }
0x1bc1   :  { %v1976_v13 = vpop.xlane.xlu1 %1975 }
0x1bc2   :  { %v1999_v21 = vadd.f32 %v3450_v2, %v1976_v13 }
0x1bc4   :  { %2008 = vst.msk [vmem:[%s3531_s8 + $0x18] sm:$0xff] %vm2004_vm1, %v1999_v21 }
0x1bc5   :  { %v1982_v14 = vpop.xlane.xlu1 %1981 }
0x1bc6   :  { %v2001_v18 = vadd.f32 %v3450_v2, %v1982_v14 }
0x1bc8   :  { %2010 = vst.msk [vmem:[%s3531_s8 + $0x28] sm:$0xff] %vm2004_vm1, %v2001_v18 }
0x1bdc   :  { %v1970_v15 = vpop.xlane.xlu0 %1969 }
0x1bdd   :  { %v1997_v51 = vadd.f32 %v3450_v2, %v1970_v15 }
0x1bdf   :  { %2006 = vst.msk [vmem:[%s3531_s8 + $0x8] sm:$0xff] %vm2004_vm1, %v1997_v51 }
0x1be0   :  { %v1973_v32 = vpop.xlane.xlu0 %1972 }
0x1be1   :  { %v1998_v44 = vadd.f32 %v3450_v2, %v1973_v32 }
0x1be3   :  { %2007 = vst.msk [vmem:[%s3531_s8 + $0x10] sm:$0xff] %vm2004_vm1, %v1998_v44 }
0x1be4   :  { %v1979_v28 = vpop.xlane.xlu0 %1978 }
0x1be5   :  { %v2000_v41 = vadd.f32 %v3450_v2, %v1979_v28 }
0x1be7   :  { %2009 = vst.msk [vmem:[%s3531_s8 + $0x20] sm:$0xff] %vm2004_vm1, %v2000_v41 }
0x1be8   :  { %v1985_v39 = vpop.xlane.xlu0 %1984 }
0x1be9   :  { %v2002_v3 = vadd.f32 %v3450_v2, %v1985_v39 }
0x1beb   :  { %2011 = vst.msk [vmem:[%s3531_s8 + $0x30] sm:$0xff] %vm2004_vm1, %v2002_v3 }
0x1c3b   :  { %v1988_v48 = vpop.xlane.xlu1 %1987 }
0x1c3c   :  { %v2003_v49 = vadd.f32 %v3450_v2, %v1988_v48 }
0x1c3e   :  { %2012 = vst.msk [vmem:[%s3531_s8 + $0x38] sm:$0xff] %vm2004_vm1, %v2003_v49 }

</bundles_post_ra>
